<compile_context>
chip_gen: v6e
topology: v6e:2x2x1
jax: 0.10.0
libtpu: 0.0.40
codegen_flags: <defaults>
</compile_context>

<pallas_src>
import numpy as np
import jax
import jax.numpy as jnp
from jax import lax
from jax.experimental import pallas as pl
from jax.experimental.pallas import tpu as pltpu


# ----------------------------------------------------------------------------
# sincos position embeddings (numpy; mirrors the MAE helpers used by __init__)
# ----------------------------------------------------------------------------
def get_1d_sincos_pos_embed_from_grid(embed_dim, pos):
    assert embed_dim % 2 == 0
    omega = np.arange(embed_dim // 2, dtype=np.float64)
    omega = omega / (embed_dim / 2.0)
    omega = 1.0 / 10000 ** omega
    pos = np.asarray(pos, dtype=np.float64).reshape(-1)
    out = np.einsum("m,d->md", pos, omega)
    return np.concatenate([np.sin(out), np.cos(out)], axis=1)  # (M, D)


def get_2d_sincos_pos_embed(embed_dim, grid_h, grid_w):
    gh = np.arange(grid_h, dtype=np.float32)
    gw = np.arange(grid_w, dtype=np.float32)
    grid = np.meshgrid(gw, gh)  # w goes first (MAE convention)
    grid = np.stack(grid, axis=0).reshape(2, 1, grid_h, grid_w)
    emb_h = get_1d_sincos_pos_embed_from_grid(embed_dim // 2, grid[0])
    emb_w = get_1d_sincos_pos_embed_from_grid(embed_dim // 2, grid[1])
    return np.concatenate([emb_h, emb_w], axis=1)  # (H*W, D)


# ----------------------------------------------------------------------------
# Pallas kernel
# ----------------------------------------------------------------------------
def _weather_embed_kernel(
    patches_ref,  # (V, TILE_L, P)  bf16  patchified input block
    ws_ref,       # (V, P, H)       bf16  wconv[v] @ wk @ Qh     (folded score weights)
    sbias_ref,    # (V, 1, H)       f32   (bconv+chemb) @ wk@Qh + bk@Qh
    spos_ref,     # (TILE_L, H)     f32   pos @ wk @ Qh
    wvv_ref,      # (V, P, D)       bf16  wconv[v] @ wv          (folded value weights)
    vbias_ref,    # (V, 1, D)       f32   (bconv+chemb) @ wv + bv
    vpos_ref,     # (TILE_L, D)     f32   pos @ wv
    eh_ref,       # (H, D)          f32   one-hot head -> lane expansion
    wo_ref,       # (D, D)          bf16  out projection (y = x @ W)
    bo_ref,       # (1, D)          f32
    out_ref,      # (TILE_L, D)     f32
):
    V, tile_l, _ = patches_ref.shape
    H = spos_ref.shape[-1]
    D = wo_ref.shape[0]

    spos = spos_ref[...]
    vpos = vpos_ref[...]
    eh = eh_ref[...]

    # Online (flash-style) softmax-accumulation over the V variables.
    # Peak live state: m/den (TILE_L,H) + acc (TILE_L,D) — independent of V.
    def body(v, carry):
        m, den, acc = carry
        pv = patches_ref[v]                                            # (TILE_L, P) bf16
        s = (jnp.dot(pv, ws_ref[v], preferred_element_type=jnp.float32)
             + spos + sbias_ref[v])                                    # (TILE_L, H)
        val = (jnp.dot(pv, wvv_ref[v], preferred_element_type=jnp.float32)
               + vpos + vbias_ref[v])                                  # (TILE_L, D)
        m_new = jnp.maximum(m, s)
        alpha = jnp.exp(m - m_new)                                     # rescale factor
        p = jnp.exp(s - m_new)
        den_new = alpha * den + p
        # expand (TILE_L,H) head weights to D lanes with a one-hot MXU matmul
        alpha_d = jnp.dot(alpha, eh, preferred_element_type=jnp.float32)
        p_d = jnp.dot(p, eh, preferred_element_type=jnp.float32)
        acc_new = alpha_d * acc + p_d * val
        return m_new, den_new, acc_new

    init = (
        jnp.full((tile_l, H), -jnp.inf, dtype=jnp.float32),
        jnp.zeros((tile_l, H), dtype=jnp.float32),
        jnp.zeros((tile_l, D), dtype=jnp.float32),
    )
    _, den, acc = lax.fori_loop(0, V, body, init, unroll=(V <= 8))

    # exact normalization (parity with the PyTorch softmax), then out projection.
    inv = 1.0 / den                                                    # (TILE_L, H)
    attn = acc * jnp.dot(inv, eh, preferred_element_type=jnp.float32)  # (TILE_L, D)
    out_ref[...] = (
        jnp.dot(attn.astype(jnp.bfloat16), wo_ref[...],
                preferred_element_type=jnp.float32)
        + bo_ref[...]
    )


# ----------------------------------------------------------------------------
# Wrapper (glue: patchify, offline weight folding, pallas_call plumbing)
# ----------------------------------------------------------------------------
def weather_embedding_forward(x, params, *, patch_size, num_heads, tile_l=None):
    B, V, Himg, Wimg = x.shape
    p = patch_size
    Hp, Wp = Himg // p, Wimg // p
    L = Hp * Wp
    P = p * p
    D = params["wconv"].shape[-1]
    H = num_heads
    assert D % H == 0
    dh = D // H

    if tile_l is None:
        # With the online-V accumulation the per-tile footprint is ~O(TILE_L*D),
        # so 256 fits comfortably on all generations (incl. v7x's 64 MiB VMEM).
        cap = min(L, 256)
        divisors = [t for t in range(8, cap + 1, 8) if L % t == 0]
        tile_l = max(divisors) if divisors else L  # full extent is always layout-legal
    assert L % tile_l == 0, f"tile_l={tile_l} must divide L={L}"

    # patchify: (B, V, H, W) -> (B, V, L, P), bf16 MXU operand.
    # TODO(synk): fuse patchify + lane-dense (B, L, V*P) layout into the kernel.
    patches = (
        x.reshape(B, V, Hp, p, Wp, p)
        .transpose(0, 1, 2, 4, 3, 5)
        .reshape(B, V, L, P)
        .astype(jnp.bfloat16)
    )

    f32, bf16 = jnp.float32, jnp.bfloat16

    # ---- parameter-only precompute, folded offline in f32 (exact algebra) ----
    wconv = params["wconv"].astype(f32)                              # (V, P, D)
    tb = (params["bconv"] + params["channel_embed"]).astype(f32)     # (V, D)
    pos = params["pos_embed"].astype(f32)                            # (L, D)
    wk = params["wk"].astype(f32)
    wv = params["wv"].astype(f32)
    wo = params["wo"].astype(f32)
    bk = params["bk"].astype(f32)
    bv = params["bv"].astype(f32)
    bo = params["bo"].astype(f32)

    q = (params["channel_query"].astype(f32) @ params["wq"].astype(f32)
         + params["bq"].astype(f32)) / np.sqrt(dh)                   # (1, D) pre-scaled query
    head_id = np.arange(D) // dh
    onehot = (head_id[:, None] == np.arange(H)[None, :]).astype(np.float32)  # (D, H)
    qh = q.reshape(D, 1) * jnp.asarray(onehot)                       # (D, H) block-diag scaled query
    wkq = wk @ qh                                                    # (D, H)

    # scores:  s[v,l,h] = patches[v,l] @ ws[v] + spos[l] + sbias[v]
    ws = jnp.einsum("vpd,dh->vph", wconv, wkq).astype(bf16)          # (V, P, H)
    sbias = (tb @ wkq + bk @ qh).reshape(V, 1, H).astype(f32)        # (V, 1, H)
    spos = (pos @ wkq).astype(f32)                                   # (L, H)

    # values:  val[v,l,:] = patches[v,l] @ wvv[v] + vpos[l] + vbias[v]
    wvv = jnp.einsum("vpd,de->vpe", wconv, wv).astype(bf16)          # (V, P, D)
    vbias = (tb @ wv + bv).reshape(V, 1, D).astype(f32)              # (V, 1, D)
    vpos = (pos @ wv).astype(f32)                                    # (L, D)

    eh = jnp.asarray(onehot.T, dtype=f32)                            # (H, D)
    wo_b = wo.astype(bf16)
    bo_f = bo.reshape(1, D).astype(f32)

    grid = (B, L // tile_l)

    def const_spec(shape):
        zeros = (0,) * len(shape)
        # grid-invariant weights: single-buffered (no need to double-buffer constants)
        return pl.BlockSpec(shape, lambda b, lt: zeros,
                            pipeline_mode=pl.Buffered(1))

    in_specs = [
        pl.BlockSpec((None, V, tile_l, P), lambda b, lt: (b, 0, lt, 0)),
        const_spec((V, P, H)),
        const_spec((V, 1, H)),
        pl.BlockSpec((tile_l, H), lambda b, lt: (lt, 0)),
        const_spec((V, P, D)),
        const_spec((V, 1, D)),
        pl.BlockSpec((tile_l, D), lambda b, lt: (lt, 0)),
        const_spec((H, D)),
        const_spec((D, D)),
        const_spec((1, D)),
    ]
    out_spec = pl.BlockSpec((None, tile_l, D), lambda b, lt: (b, lt, 0))

    # explicit VMEM budget from the actual block footprint (+ headroom for the
    # in-kernel f32 accumulators / compiler scratch), capped at v7x's 64 MiB.
    def nbytes(shape, dtype):
        return int(np.prod(shape)) * np.dtype(dtype).itemsize

    blk_bytes = (
        2 * nbytes((V, tile_l, P), bf16)        # patches   (double-buffered)
        + 2 * nbytes((tile_l, H), f32)          # spos
        + 2 * nbytes((tile_l, D), f32)          # vpos
        + 2 * nbytes((tile_l, D), f32)          # out
        + nbytes((V, P, H), bf16) + nbytes((V, 1, H), f32)
        + nbytes((V, P, D), bf16) + nbytes((V, 1, D), f32)
        + nbytes((H, D), f32) + nbytes((D, D), bf16) + nbytes((1, D), f32)
    )
    vmem_limit = int(min(max(2 * blk_bytes + (8 << 20), 16 << 20), 64 << 20))

    out = pl.pallas_call(
        _weather_embed_kernel,
        out_shape=jax.ShapeDtypeStruct((B, L, D), jnp.float32),
        grid=grid,
        in_specs=in_specs,
        out_specs=out_spec,
        compiler_params=pltpu.CompilerParams(
            dimension_semantics=("parallel", "parallel"),
            vmem_limit_bytes=vmem_limit,
        ),
    )(patches, ws, sbias, spos, wvv, vbias, vpos, eh, wo_b, bo_f)
    return out


# ----------------------------------------------------------------------------
# Deterministic synthetic parameter init (shapes from WeatherEmbedding.__init__)
# ----------------------------------------------------------------------------
def init_params(key, num_vars, img_size, patch_size, embed_dim):
    Himg, Wimg = img_size
    p = patch_size
    P = p * p
    D = embed_dim
    ks = jax.random.split(key, 9)
    f = jnp.float32
    params = dict(
        # per-variable PatchEmbed conv: (D, 1, p, p) flattened to (P, D)
        wconv=(0.02 * jax.random.normal(ks[0], (num_vars, P, D))).astype(f),
        bconv=(0.02 * jax.random.normal(ks[1], (num_vars, D))).astype(f),
        # module inits channel_query to zeros; random here so attention is non-trivial
        channel_query=(0.5 * jax.random.normal(ks[2], (1, D))).astype(f),
        # MultiheadAttention in_proj (split) and out_proj, stored transposed (y = x @ W)
        wq=(0.1 * jax.random.normal(ks[3], (D, D))).astype(f),
        wk=(0.1 * jax.random.normal(ks[4], (D, D))).astype(f),
        wv=(0.1 * jax.random.normal(ks[5], (D, D))).astype(f),
        wo=(0.1 * jax.random.normal(ks[6], (D, D))).astype(f),
        bq=(0.02 * jax.random.normal(ks[7], (1, D))).astype(f),
        bk=(0.02 * jax.random.normal(ks[8], (1, D))).astype(f),
        bv=jnp.zeros((1, D), f),
        bo=jnp.zeros((1, D), f),
        # sincos embeddings exactly as in initialize_weights()
        pos_embed=jnp.asarray(get_2d_sincos_pos_embed(D, Himg // p, Wimg // p), dtype=f),
        channel_embed=jnp.asarray(
            get_1d_sincos_pos_embed_from_grid(D, np.arange(num_vars)), dtype=f
        ),
    )
    return params


# ----------------------------------------------------------------------------
# Pure-numpy reference (mirrors the PyTorch forward)
# ----------------------------------------------------------------------------
def reference_forward(x, params, patch_size, num_heads):
    wconv = params["wconv"]; bconv = params["bconv"]
    chemb = params["channel_embed"]; pos = params["pos_embed"]
    wq = params["wq"]; wk = params["wk"]; wv = params["wv"]; wo = params["wo"]
    bq = params["bq"]; bk = params["bk"]; bv = params["bv"]; bo = params["bo"]
    cq = params["channel_query"]

    B, V, Himg, Wimg = x.shape
    p = patch_size
    Hp, Wp = Himg // p, Wimg // p
    L, P = Hp * Wp, p * p
    D = wconv.shape[-1]
    dh = D // num_heads

    patches = (
        x.reshape(B, V, Hp, p, Wp, p).transpose(0, 1, 2, 4, 3, 5).reshape(B, V, L, P)
    )
    tokens = np.einsum("bvlp,vpd->bvld", patches, wconv) + bconv[None, :, None, :]
    tokens = tokens + chemb[None, :, None, :] + pos[None, None, :, :]

    q = (cq @ wq + bq) / np.sqrt(dh)            # (1, D)
    k = tokens @ wk + bk                         # (B, V, L, D)
    v = tokens @ wv + bv
    qh = q.reshape(num_heads, dh)
    kh = k.reshape(B, V, L, num_heads, dh)
    vh = v.reshape(B, V, L, num_heads, dh)
    s = np.einsum("hd,bvlhd->blhv", qh, kh)
    s = s - s.max(axis=-1, keepdims=True)
    e = np.exp(s)
    a = e / e.sum(axis=-1, keepdims=True)
    o = np.einsum("blhv,bvlhd->blhd", a, vh).reshape(B, L, D)
    return o @ wo + bo


if __name__ == "__main__":
    B, V = 2, 4
    img_size = (16, 16)
    patch_size = 2
    embed_dim = 32
    num_heads = 4

    key = jax.random.PRNGKey(0)
    kx, kp = jax.random.split(key)
    x = jax.random.normal(kx, (B, V) + img_size, dtype=jnp.float32)
    params = init_params(kp, V, img_size, patch_size, embed_dim)

    out = weather_embedding_forward(
        x, params, patch_size=patch_size, num_heads=num_heads
    )
    out = jax.block_until_ready(out)

    ref = reference_forward(
        np.asarray(x, dtype=np.float32),
        {k: np.asarray(v, dtype=np.float32) for k, v in params.items()},
        patch_size,
        num_heads,
    )
    assert out.shape == ref.shape == (B, (img_size[0] // patch_size) ** 2, embed_dim)
    if not np.allclose(np.asarray(out), ref, atol=2e-2, rtol=2e-2):
        err = float(np.max(np.abs(np.asarray(out) - ref)))
        raise AssertionError(f"kernel/reference mismatch, max abs err = {err}")
    print("KERNEL_OK")
</pallas_src>

<mosaic_0001>
module attributes {stable_mosaic.version = 11 : i64} {
  func.func @_weather_embed_kernel(%arg0: i32, %arg1: i32, %arg2: memref<1x4x64x4xbf16, #tpu.memory_space<vmem>>, %arg3: memref<4x4x4xbf16, #tpu.memory_space<vmem>>, %arg4: memref<4x1x4xf32, #tpu.memory_space<vmem>>, %arg5: memref<64x4xf32, #tpu.memory_space<vmem>>, %arg6: memref<4x4x32xbf16, #tpu.memory_space<vmem>>, %arg7: memref<4x1x32xf32, #tpu.memory_space<vmem>>, %arg8: memref<64x32xf32, #tpu.memory_space<vmem>>, %arg9: memref<4x32xf32, #tpu.memory_space<vmem>>, %arg10: memref<32x32xbf16, #tpu.memory_space<vmem>>, %arg11: memref<1x32xf32, #tpu.memory_space<vmem>>, %arg12: memref<1x64x32xf32, #tpu.memory_space<vmem>>) attributes {dimension_semantics = [#tpu.dimension_semantics<parallel>, #tpu.dimension_semantics<parallel>], iteration_bounds = array<i64: 2, 1>, scalar_prefetch = 0 : i64, scratch_operands = 0 : i64, tpu.core_type = #tpu.core_type<tc>, window_params = [{transform_indices = @transform_0, window_bounds = array<i64: 1, 4, 64, 4>}, {pipeline_mode = #tpu.pipeline_mode<synchronous>, transform_indices = @transform_1, window_bounds = array<i64: 4, 4, 4>}, {pipeline_mode = #tpu.pipeline_mode<synchronous>, transform_indices = @transform_2, window_bounds = array<i64: 4, 1, 4>}, {transform_indices = @transform_3, window_bounds = array<i64: 64, 4>}, {pipeline_mode = #tpu.pipeline_mode<synchronous>, transform_indices = @transform_4, window_bounds = array<i64: 4, 4, 32>}, {pipeline_mode = #tpu.pipeline_mode<synchronous>, transform_indices = @transform_5, window_bounds = array<i64: 4, 1, 32>}, {transform_indices = @transform_6, window_bounds = array<i64: 64, 32>}, {pipeline_mode = #tpu.pipeline_mode<synchronous>, transform_indices = @transform_7, window_bounds = array<i64: 4, 32>}, {pipeline_mode = #tpu.pipeline_mode<synchronous>, transform_indices = @transform_8, window_bounds = array<i64: 32, 32>}, {pipeline_mode = #tpu.pipeline_mode<synchronous>, transform_indices = @transform_9, window_bounds = array<i64: 1, 32>}, {transform_indices = @transform_10, window_bounds = array<i64: 1, 64, 32>}]} {
    %c0 = arith.constant 0 : index
    %c0_0 = arith.constant 0 : index
    %0 = vector.load %arg5[%c0, %c0_0] : memref<64x4xf32, #tpu.memory_space<vmem>>, vector<64x4xf32>
    %c0_1 = arith.constant 0 : index
    %c0_2 = arith.constant 0 : index
    %1 = vector.load %arg8[%c0_1, %c0_2] : memref<64x32xf32, #tpu.memory_space<vmem>>, vector<64x32xf32>
    %c0_3 = arith.constant 0 : index
    %c0_4 = arith.constant 0 : index
    %2 = vector.load %arg9[%c0_3, %c0_4] : memref<4x32xf32, #tpu.memory_space<vmem>>, vector<4x32xf32>
    %cst = arith.constant 0xFF800000 : f32
    %3 = vector.broadcast %cst : f32 to vector<64x4xf32>
    %cst_5 = arith.constant 0.000000e+00 : f32
    %4 = vector.broadcast %cst_5 : f32 to vector<64x4xf32>
    %cst_6 = arith.constant 0.000000e+00 : f32
    %5 = vector.broadcast %cst_6 : f32 to vector<64x32xf32>
    %c0_i32 = arith.constant 0 : i32
    %c0_7 = arith.constant 0 : index
    %6 = arith.index_cast %c0_i32 : i32 to index
    %c0_8 = arith.constant 0 : index
    %c0_9 = arith.constant 0 : index
    %7 = vector.load %arg2[%c0_7, %6, %c0_8, %c0_9] : memref<1x4x64x4xbf16, #tpu.memory_space<vmem>>, vector<1x1x64x4xbf16>
    %8 = vector.shape_cast %7 : vector<1x1x64x4xbf16> to vector<64x4xbf16>
    %9 = arith.index_cast %c0_i32 : i32 to index
    %c0_10 = arith.constant 0 : index
    %c0_11 = arith.constant 0 : index
    %10 = vector.load %arg3[%9, %c0_10, %c0_11] : memref<4x4x4xbf16, #tpu.memory_space<vmem>>, vector<1x4x4xbf16>
    %11 = vector.shape_cast %10 : vector<1x4x4xbf16> to vector<4x4xbf16>
    %cst_12 = arith.constant dense<0.000000e+00> : vector<64x4xf32>
    %12 = tpu.matmul %8, %11, %cst_12 {dimension_numbers = #tpu.dot_dimension_numbers<[1], [0], [0], [1], [0, 0, 1, 1], [], []>} : vector<64x4xbf16>, vector<4x4xbf16>, vector<64x4xf32> -> vector<64x4xf32>
    %13 = arith.addf %12, %0 : vector<64x4xf32>
    %14 = arith.index_cast %c0_i32 : i32 to index
    %c0_13 = arith.constant 0 : index
    %c0_14 = arith.constant 0 : index
    %15 = vector.load %arg4[%14, %c0_13, %c0_14] : memref<4x1x4xf32, #tpu.memory_space<vmem>>, vector<1x1x4xf32>
    %16 = vector.shape_cast %15 : vector<1x1x4xf32> to vector<1x4xf32>
    %17 = vector.broadcast %16 : vector<1x4xf32> to vector<64x4xf32>
    %18 = arith.addf %13, %17 : vector<64x4xf32>
    %19 = arith.index_cast %c0_i32 : i32 to index
    %c0_15 = arith.constant 0 : index
    %c0_16 = arith.constant 0 : index
    %20 = vector.load %arg6[%19, %c0_15, %c0_16] : memref<4x4x32xbf16, #tpu.memory_space<vmem>>, vector<1x4x32xbf16>
    %21 = vector.shape_cast %20 : vector<1x4x32xbf16> to vector<4x32xbf16>
    %cst_17 = arith.constant dense<0.000000e+00> : vector<64x32xf32>
    %22 = tpu.matmul %8, %21, %cst_17 {dimension_numbers = #tpu.dot_dimension_numbers<[1], [0], [0], [1], [0, 0, 1, 1], [], []>} : vector<64x4xbf16>, vector<4x32xbf16>, vector<64x32xf32> -> vector<64x32xf32>
    %23 = arith.addf %22, %1 : vector<64x32xf32>
    %24 = arith.index_cast %c0_i32 : i32 to index
    %c0_18 = arith.constant 0 : index
    %c0_19 = arith.constant 0 : index
    %25 = vector.load %arg7[%24, %c0_18, %c0_19] : memref<4x1x32xf32, #tpu.memory_space<vmem>>, vector<1x1x32xf32>
    %26 = vector.shape_cast %25 : vector<1x1x32xf32> to vector<1x32xf32>
    %27 = vector.broadcast %26 : vector<1x32xf32> to vector<64x32xf32>
    %28 = arith.addf %23, %27 : vector<64x32xf32>
    %29 = arith.maximumf %3, %18 : vector<64x4xf32>
    %30 = arith.subf %3, %29 : vector<64x4xf32>
    %31 = math.exp %30 : vector<64x4xf32>
    %32 = arith.subf %18, %29 : vector<64x4xf32>
    %33 = math.exp %32 : vector<64x4xf32>
    %34 = arith.mulf %31, %4 : vector<64x4xf32>
    %35 = arith.addf %34, %33 : vector<64x4xf32>
    %cst_20 = arith.constant dense<0.000000e+00> : vector<64x32xf32>
    %36 = tpu.matmul %31, %2, %cst_20 {dimension_numbers = #tpu.dot_dimension_numbers<[1], [0], [0], [1], [0, 0, 1, 1], [], []>} : vector<64x4xf32>, vector<4x32xf32>, vector<64x32xf32> -> vector<64x32xf32>
    %cst_21 = arith.constant dense<0.000000e+00> : vector<64x32xf32>
    %37 = tpu.matmul %33, %2, %cst_21 {dimension_numbers = #tpu.dot_dimension_numbers<[1], [0], [0], [1], [0, 0, 1, 1], [], []>} : vector<64x4xf32>, vector<4x32xf32>, vector<64x32xf32> -> vector<64x32xf32>
    %38 = arith.mulf %36, %5 : vector<64x32xf32>
    %39 = arith.mulf %37, %28 : vector<64x32xf32>
    %40 = arith.addf %38, %39 : vector<64x32xf32>
    %c1_i32 = arith.constant 1 : i32
    %c0_22 = arith.constant 0 : index
    %41 = arith.index_cast %c1_i32 : i32 to index
    %c0_23 = arith.constant 0 : index
    %c0_24 = arith.constant 0 : index
    %42 = vector.load %arg2[%c0_22, %41, %c0_23, %c0_24] : memref<1x4x64x4xbf16, #tpu.memory_space<vmem>>, vector<1x1x64x4xbf16>
    %43 = vector.shape_cast %42 : vector<1x1x64x4xbf16> to vector<64x4xbf16>
    %44 = arith.index_cast %c1_i32 : i32 to index
    %c0_25 = arith.constant 0 : index
    %c0_26 = arith.constant 0 : index
    %45 = vector.load %arg3[%44, %c0_25, %c0_26] : memref<4x4x4xbf16, #tpu.memory_space<vmem>>, vector<1x4x4xbf16>
    %46 = vector.shape_cast %45 : vector<1x4x4xbf16> to vector<4x4xbf16>
    %cst_27 = arith.constant dense<0.000000e+00> : vector<64x4xf32>
    %47 = tpu.matmul %43, %46, %cst_27 {dimension_numbers = #tpu.dot_dimension_numbers<[1], [0], [0], [1], [0, 0, 1, 1], [], []>} : vector<64x4xbf16>, vector<4x4xbf16>, vector<64x4xf32> -> vector<64x4xf32>
    %48 = arith.addf %47, %0 : vector<64x4xf32>
    %49 = arith.index_cast %c1_i32 : i32 to index
    %c0_28 = arith.constant 0 : index
    %c0_29 = arith.constant 0 : index
    %50 = vector.load %arg4[%49, %c0_28, %c0_29] : memref<4x1x4xf32, #tpu.memory_space<vmem>>, vector<1x1x4xf32>
    %51 = vector.shape_cast %50 : vector<1x1x4xf32> to vector<1x4xf32>
    %52 = vector.broadcast %51 : vector<1x4xf32> to vector<64x4xf32>
    %53 = arith.addf %48, %52 : vector<64x4xf32>
    %54 = arith.index_cast %c1_i32 : i32 to index
    %c0_30 = arith.constant 0 : index
    %c0_31 = arith.constant 0 : index
    %55 = vector.load %arg6[%54, %c0_30, %c0_31] : memref<4x4x32xbf16, #tpu.memory_space<vmem>>, vector<1x4x32xbf16>
    %56 = vector.shape_cast %55 : vector<1x4x32xbf16> to vector<4x32xbf16>
    %cst_32 = arith.constant dense<0.000000e+00> : vector<64x32xf32>
    %57 = tpu.matmul %43, %56, %cst_32 {dimension_numbers = #tpu.dot_dimension_numbers<[1], [0], [0], [1], [0, 0, 1, 1], [], []>} : vector<64x4xbf16>, vector<4x32xbf16>, vector<64x32xf32> -> vector<64x32xf32>
    %58 = arith.addf %57, %1 : vector<64x32xf32>
    %59 = arith.index_cast %c1_i32 : i32 to index
    %c0_33 = arith.constant 0 : index
    %c0_34 = arith.constant 0 : index
    %60 = vector.load %arg7[%59, %c0_33, %c0_34] : memref<4x1x32xf32, #tpu.memory_space<vmem>>, vector<1x1x32xf32>
    %61 = vector.shape_cast %60 : vector<1x1x32xf32> to vector<1x32xf32>
    %62 = vector.broadcast %61 : vector<1x32xf32> to vector<64x32xf32>
    %63 = arith.addf %58, %62 : vector<64x32xf32>
    %64 = arith.maximumf %29, %53 : vector<64x4xf32>
    %65 = arith.subf %29, %64 : vector<64x4xf32>
    %66 = math.exp %65 : vector<64x4xf32>
    %67 = arith.subf %53, %64 : vector<64x4xf32>
    %68 = math.exp %67 : vector<64x4xf32>
    %69 = arith.mulf %66, %35 : vector<64x4xf32>
    %70 = arith.addf %69, %68 : vector<64x4xf32>
    %cst_35 = arith.constant dense<0.000000e+00> : vector<64x32xf32>
    %71 = tpu.matmul %66, %2, %cst_35 {dimension_numbers = #tpu.dot_dimension_numbers<[1], [0], [0], [1], [0, 0, 1, 1], [], []>} : vector<64x4xf32>, vector<4x32xf32>, vector<64x32xf32> -> vector<64x32xf32>
    %cst_36 = arith.constant dense<0.000000e+00> : vector<64x32xf32>
    %72 = tpu.matmul %68, %2, %cst_36 {dimension_numbers = #tpu.dot_dimension_numbers<[1], [0], [0], [1], [0, 0, 1, 1], [], []>} : vector<64x4xf32>, vector<4x32xf32>, vector<64x32xf32> -> vector<64x32xf32>
    %73 = arith.mulf %71, %40 : vector<64x32xf32>
    %74 = arith.mulf %72, %63 : vector<64x32xf32>
    %75 = arith.addf %73, %74 : vector<64x32xf32>
    %c2_i32 = arith.constant 2 : i32
    %c0_37 = arith.constant 0 : index
    %76 = arith.index_cast %c2_i32 : i32 to index
    %c0_38 = arith.constant 0 : index
    %c0_39 = arith.constant 0 : index
    %77 = vector.load %arg2[%c0_37, %76, %c0_38, %c0_39] : memref<1x4x64x4xbf16, #tpu.memory_space<vmem>>, vector<1x1x64x4xbf16>
    %78 = vector.shape_cast %77 : vector<1x1x64x4xbf16> to vector<64x4xbf16>
    %79 = arith.index_cast %c2_i32 : i32 to index
    %c0_40 = arith.constant 0 : index
    %c0_41 = arith.constant 0 : index
    %80 = vector.load %arg3[%79, %c0_40, %c0_41] : memref<4x4x4xbf16, #tpu.memory_space<vmem>>, vector<1x4x4xbf16>
    %81 = vector.shape_cast %80 : vector<1x4x4xbf16> to vector<4x4xbf16>
    %cst_42 = arith.constant dense<0.000000e+00> : vector<64x4xf32>
    %82 = tpu.matmul %78, %81, %cst_42 {dimension_numbers = #tpu.dot_dimension_numbers<[1], [0], [0], [1], [0, 0, 1, 1], [], []>} : vector<64x4xbf16>, vector<4x4xbf16>, vector<64x4xf32> -> vector<64x4xf32>
    %83 = arith.addf %82, %0 : vector<64x4xf32>
    %84 = arith.index_cast %c2_i32 : i32 to index
    %c0_43 = arith.constant 0 : index
    %c0_44 = arith.constant 0 : index
    %85 = vector.load %arg4[%84, %c0_43, %c0_44] : memref<4x1x4xf32, #tpu.memory_space<vmem>>, vector<1x1x4xf32>
    %86 = vector.shape_cast %85 : vector<1x1x4xf32> to vector<1x4xf32>
    %87 = vector.broadcast %86 : vector<1x4xf32> to vector<64x4xf32>
    %88 = arith.addf %83, %87 : vector<64x4xf32>
    %89 = arith.index_cast %c2_i32 : i32 to index
    %c0_45 = arith.constant 0 : index
    %c0_46 = arith.constant 0 : index
    %90 = vector.load %arg6[%89, %c0_45, %c0_46] : memref<4x4x32xbf16, #tpu.memory_space<vmem>>, vector<1x4x32xbf16>
    %91 = vector.shape_cast %90 : vector<1x4x32xbf16> to vector<4x32xbf16>
    %cst_47 = arith.constant dense<0.000000e+00> : vector<64x32xf32>
    %92 = tpu.matmul %78, %91, %cst_47 {dimension_numbers = #tpu.dot_dimension_numbers<[1], [0], [0], [1], [0, 0, 1, 1], [], []>} : vector<64x4xbf16>, vector<4x32xbf16>, vector<64x32xf32> -> vector<64x32xf32>
    %93 = arith.addf %92, %1 : vector<64x32xf32>
    %94 = arith.index_cast %c2_i32 : i32 to index
    %c0_48 = arith.constant 0 : index
    %c0_49 = arith.constant 0 : index
    %95 = vector.load %arg7[%94, %c0_48, %c0_49] : memref<4x1x32xf32, #tpu.memory_space<vmem>>, vector<1x1x32xf32>
    %96 = vector.shape_cast %95 : vector<1x1x32xf32> to vector<1x32xf32>
    %97 = vector.broadcast %96 : vector<1x32xf32> to vector<64x32xf32>
    %98 = arith.addf %93, %97 : vector<64x32xf32>
    %99 = arith.maximumf %64, %88 : vector<64x4xf32>
    %100 = arith.subf %64, %99 : vector<64x4xf32>
    %101 = math.exp %100 : vector<64x4xf32>
    %102 = arith.subf %88, %99 : vector<64x4xf32>
    %103 = math.exp %102 : vector<64x4xf32>
    %104 = arith.mulf %101, %70 : vector<64x4xf32>
    %105 = arith.addf %104, %103 : vector<64x4xf32>
    %cst_50 = arith.constant dense<0.000000e+00> : vector<64x32xf32>
    %106 = tpu.matmul %101, %2, %cst_50 {dimension_numbers = #tpu.dot_dimension_numbers<[1], [0], [0], [1], [0, 0, 1, 1], [], []>} : vector<64x4xf32>, vector<4x32xf32>, vector<64x32xf32> -> vector<64x32xf32>
    %cst_51 = arith.constant dense<0.000000e+00> : vector<64x32xf32>
    %107 = tpu.matmul %103, %2, %cst_51 {dimension_numbers = #tpu.dot_dimension_numbers<[1], [0], [0], [1], [0, 0, 1, 1], [], []>} : vector<64x4xf32>, vector<4x32xf32>, vector<64x32xf32> -> vector<64x32xf32>
    %108 = arith.mulf %106, %75 : vector<64x32xf32>
    %109 = arith.mulf %107, %98 : vector<64x32xf32>
    %110 = arith.addf %108, %109 : vector<64x32xf32>
    %c3_i32 = arith.constant 3 : i32
    %c0_52 = arith.constant 0 : index
    %111 = arith.index_cast %c3_i32 : i32 to index
    %c0_53 = arith.constant 0 : index
    %c0_54 = arith.constant 0 : index
    %112 = vector.load %arg2[%c0_52, %111, %c0_53, %c0_54] : memref<1x4x64x4xbf16, #tpu.memory_space<vmem>>, vector<1x1x64x4xbf16>
    %113 = vector.shape_cast %112 : vector<1x1x64x4xbf16> to vector<64x4xbf16>
    %114 = arith.index_cast %c3_i32 : i32 to index
    %c0_55 = arith.constant 0 : index
    %c0_56 = arith.constant 0 : index
    %115 = vector.load %arg3[%114, %c0_55, %c0_56] : memref<4x4x4xbf16, #tpu.memory_space<vmem>>, vector<1x4x4xbf16>
    %116 = vector.shape_cast %115 : vector<1x4x4xbf16> to vector<4x4xbf16>
    %cst_57 = arith.constant dense<0.000000e+00> : vector<64x4xf32>
    %117 = tpu.matmul %113, %116, %cst_57 {dimension_numbers = #tpu.dot_dimension_numbers<[1], [0], [0], [1], [0, 0, 1, 1], [], []>} : vector<64x4xbf16>, vector<4x4xbf16>, vector<64x4xf32> -> vector<64x4xf32>
    %118 = arith.addf %117, %0 : vector<64x4xf32>
    %119 = arith.index_cast %c3_i32 : i32 to index
    %c0_58 = arith.constant 0 : index
    %c0_59 = arith.constant 0 : index
    %120 = vector.load %arg4[%119, %c0_58, %c0_59] : memref<4x1x4xf32, #tpu.memory_space<vmem>>, vector<1x1x4xf32>
    %121 = vector.shape_cast %120 : vector<1x1x4xf32> to vector<1x4xf32>
    %122 = vector.broadcast %121 : vector<1x4xf32> to vector<64x4xf32>
    %123 = arith.addf %118, %122 : vector<64x4xf32>
    %124 = arith.index_cast %c3_i32 : i32 to index
    %c0_60 = arith.constant 0 : index
    %c0_61 = arith.constant 0 : index
    %125 = vector.load %arg6[%124, %c0_60, %c0_61] : memref<4x4x32xbf16, #tpu.memory_space<vmem>>, vector<1x4x32xbf16>
    %126 = vector.shape_cast %125 : vector<1x4x32xbf16> to vector<4x32xbf16>
    %cst_62 = arith.constant dense<0.000000e+00> : vector<64x32xf32>
    %127 = tpu.matmul %113, %126, %cst_62 {dimension_numbers = #tpu.dot_dimension_numbers<[1], [0], [0], [1], [0, 0, 1, 1], [], []>} : vector<64x4xbf16>, vector<4x32xbf16>, vector<64x32xf32> -> vector<64x32xf32>
    %128 = arith.addf %127, %1 : vector<64x32xf32>
    %129 = arith.index_cast %c3_i32 : i32 to index
    %c0_63 = arith.constant 0 : index
    %c0_64 = arith.constant 0 : index
    %130 = vector.load %arg7[%129, %c0_63, %c0_64] : memref<4x1x32xf32, #tpu.memory_space<vmem>>, vector<1x1x32xf32>
    %131 = vector.shape_cast %130 : vector<1x1x32xf32> to vector<1x32xf32>
    %132 = vector.broadcast %131 : vector<1x32xf32> to vector<64x32xf32>
    %133 = arith.addf %128, %132 : vector<64x32xf32>
    %134 = arith.maximumf %99, %123 : vector<64x4xf32>
    %135 = arith.subf %99, %134 : vector<64x4xf32>
    %136 = math.exp %135 : vector<64x4xf32>
    %137 = arith.subf %123, %134 : vector<64x4xf32>
    %138 = math.exp %137 : vector<64x4xf32>
    %139 = arith.mulf %136, %105 : vector<64x4xf32>
    %140 = arith.addf %139, %138 : vector<64x4xf32>
    %cst_65 = arith.constant dense<0.000000e+00> : vector<64x32xf32>
    %141 = tpu.matmul %136, %2, %cst_65 {dimension_numbers = #tpu.dot_dimension_numbers<[1], [0], [0], [1], [0, 0, 1, 1], [], []>} : vector<64x4xf32>, vector<4x32xf32>, vector<64x32xf32> -> vector<64x32xf32>
    %cst_66 = arith.constant dense<0.000000e+00> : vector<64x32xf32>
    %142 = tpu.matmul %138, %2, %cst_66 {dimension_numbers = #tpu.dot_dimension_numbers<[1], [0], [0], [1], [0, 0, 1, 1], [], []>} : vector<64x4xf32>, vector<4x32xf32>, vector<64x32xf32> -> vector<64x32xf32>
    %143 = arith.mulf %141, %110 : vector<64x32xf32>
    %144 = arith.mulf %142, %133 : vector<64x32xf32>
    %145 = arith.addf %143, %144 : vector<64x32xf32>
    %c4_i32 = arith.constant 4 : i32
    %cst_67 = arith.constant 1.000000e+00 : f32
    %146 = vector.broadcast %cst_67 : f32 to vector<64x4xf32>
    %147 = arith.divf %146, %140 : vector<64x4xf32>
    %cst_68 = arith.constant dense<0.000000e+00> : vector<64x32xf32>
    %148 = tpu.matmul %147, %2, %cst_68 {dimension_numbers = #tpu.dot_dimension_numbers<[1], [0], [0], [1], [0, 0, 1, 1], [], []>} : vector<64x4xf32>, vector<4x32xf32>, vector<64x32xf32> -> vector<64x32xf32>
    %149 = arith.mulf %145, %148 : vector<64x32xf32>
    %150 = arith.truncf %149 : vector<64x32xf32> to vector<64x32xbf16>
    %c0_69 = arith.constant 0 : index
    %c0_70 = arith.constant 0 : index
    %151 = vector.load %arg10[%c0_69, %c0_70] : memref<32x32xbf16, #tpu.memory_space<vmem>>, vector<32x32xbf16>
    %cst_71 = arith.constant dense<0.000000e+00> : vector<64x32xf32>
    %152 = tpu.matmul %150, %151, %cst_71 {dimension_numbers = #tpu.dot_dimension_numbers<[1], [0], [0], [1], [0, 0, 1, 1], [], []>} : vector<64x32xbf16>, vector<32x32xbf16>, vector<64x32xf32> -> vector<64x32xf32>
    %c0_72 = arith.constant 0 : index
    %c0_73 = arith.constant 0 : index
    %153 = vector.load %arg11[%c0_72, %c0_73] : memref<1x32xf32, #tpu.memory_space<vmem>>, vector<1x32xf32>
    %154 = vector.broadcast %153 : vector<1x32xf32> to vector<64x32xf32>
    %155 = arith.addf %152, %154 : vector<64x32xf32>
    %c0_74 = arith.constant 0 : index
    %c0_75 = arith.constant 0 : index
    %c0_76 = arith.constant 0 : index
    %156 = vector.load %arg12[%c0_74, %c0_75, %c0_76] : memref<1x64x32xf32, #tpu.memory_space<vmem>>, vector<1x64x32xf32>
    %157 = vector.shape_cast %156 : vector<1x64x32xf32> to vector<64x32xf32>
    %158 = vector.shape_cast %155 : vector<64x32xf32> to vector<1x64x32xf32>
    tpu.vector_store %arg12[%c0_74, %c0_75, %c0_76], %158 {strides = array<i32>} : memref<1x64x32xf32, #tpu.memory_space<vmem>>, vector<1x64x32xf32>,
    return
  }
  func.func @transform_0(%arg0: i32, %arg1: i32) -> (i32, i32, i32, i32) {
    %c0_i32 = arith.constant 0 : i32
    %c0_i32_0 = arith.constant 0 : i32
    %c0_i32_1 = arith.constant 0 : i32
    return %arg0, %c0_i32, %arg1, %c0_i32_0 : i32, i32, i32, i32
  }
  func.func @transform_1(%arg0: i32, %arg1: i32) -> (i32, i32, i32) {
    %c0_i32 = arith.constant 0 : i32
    %c0_i32_0 = arith.constant 0 : i32
    %c0_i32_1 = arith.constant 0 : i32
    %c0_i32_2 = arith.constant 0 : i32
    return %c0_i32, %c0_i32_0, %c0_i32_1 : i32, i32, i32
  }
  func.func @transform_2(%arg0: i32, %arg1: i32) -> (i32, i32, i32) {
    %c0_i32 = arith.constant 0 : i32
    %c0_i32_0 = arith.constant 0 : i32
    %c0_i32_1 = arith.constant 0 : i32
    %c0_i32_2 = arith.constant 0 : i32
    return %c0_i32, %c0_i32_0, %c0_i32_1 : i32, i32, i32
  }
  func.func @transform_3(%arg0: i32, %arg1: i32) -> (i32, i32) {
    %c0_i32 = arith.constant 0 : i32
    %c0_i32_0 = arith.constant 0 : i32
    return %arg1, %c0_i32 : i32, i32
  }
  func.func @transform_4(%arg0: i32, %arg1: i32) -> (i32, i32, i32) {
    %c0_i32 = arith.constant 0 : i32
    %c0_i32_0 = arith.constant 0 : i32
    %c0_i32_1 = arith.constant 0 : i32
    %c0_i32_2 = arith.constant 0 : i32
    return %c0_i32, %c0_i32_0, %c0_i32_1 : i32, i32, i32
  }
  func.func @transform_5(%arg0: i32, %arg1: i32) -> (i32, i32, i32) {
    %c0_i32 = arith.constant 0 : i32
    %c0_i32_0 = arith.constant 0 : i32
    %c0_i32_1 = arith.constant 0 : i32
    %c0_i32_2 = arith.constant 0 : i32
    return %c0_i32, %c0_i32_0, %c0_i32_1 : i32, i32, i32
  }
  func.func @transform_6(%arg0: i32, %arg1: i32) -> (i32, i32) {
    %c0_i32 = arith.constant 0 : i32
    %c0_i32_0 = arith.constant 0 : i32
    return %arg1, %c0_i32 : i32, i32
  }
  func.func @transform_7(%arg0: i32, %arg1: i32) -> (i32, i32) {
    %c0_i32 = arith.constant 0 : i32
    %c0_i32_0 = arith.constant 0 : i32
    %c0_i32_1 = arith.constant 0 : i32
    return %c0_i32, %c0_i32_0 : i32, i32
  }
  func.func @transform_8(%arg0: i32, %arg1: i32) -> (i32, i32) {
    %c0_i32 = arith.constant 0 : i32
    %c0_i32_0 = arith.constant 0 : i32
    %c0_i32_1 = arith.constant 0 : i32
    return %c0_i32, %c0_i32_0 : i32, i32
  }
  func.func @transform_9(%arg0: i32, %arg1: i32) -> (i32, i32) {
    %c0_i32 = arith.constant 0 : i32
    %c0_i32_0 = arith.constant 0 : i32
    %c0_i32_1 = arith.constant 0 : i32
    return %c0_i32, %c0_i32_0 : i32, i32
  }
  func.func @transform_10(%arg0: i32, %arg1: i32) -> (i32, i32, i32) {
    %c0_i32 = arith.constant 0 : i32
    %c0_i32_0 = arith.constant 0 : i32
    return %arg0, %arg1, %c0_i32 : i32, i32, i32
  }
}

</mosaic_0001>

<bundles_post_ra>
// kernel: tpu_custom_call.1
= control target key start
LH: loop header
LB: loop body
LE: loop exit
PB: predicated region body
PF: predicated region fallthrough
CT: control target
= control target key end

     0   :  { %s3935_s13 = smov 0   ;;  %s3937_s14 = smov 0   ;;  %s4749_s0 = inlined_call_operand.vmem [shape: bf16[2,4,64,4], index: 0, kind: input, shape index: {}]   ;;  %s4750_s1 = inlined_call_operand.vmem [shape: bf16[4,4,4], index: 1, kind: input, shape index: {}]   ;;  %s4751_s2 = inlined_call_operand.vmem [shape: f32[4,1,4], index: 2, kind: input, shape index: {}]   ;;  %s4752_s3 = inlined_call_operand.vmem [shape: f32[64,4], index: 3, kind: input, shape index: {}]   ;;  %s4753_s4 = inlined_call_operand.vmem [shape: bf16[4,4,32], index: 4, kind: input, shape index: {}]   ;;  %s4754_s5 = inlined_call_operand.vmem [shape: f32[4,1,32], index: 5, kind: input, shape index: {}]   ;;  %s4755_s6 = inlined_call_operand.vmem [shape: f32[64,32], index: 6, kind: input, shape index: {}]   ;;  %s4756_s7 = inlined_call_operand.vmem [shape: f32[4,32], index: 7, kind: input, shape index: {}]   ;;  %s4757_s8 = inlined_call_operand.vmem [shape: bf16[32,32], index: 8, kind: input, shape index: {}]   ;;  %s4758_s9 = inlined_call_operand.vmem [shape: f32[1,32], index: 9, kind: input, shape index: {}]   ;;  %s4759_s10 = inlined_call_operand.vmem [shape: f32[2,64,32], index: 10, kind: output, shape index: {}]  }
   0x1   :  { %s3939_s15 = smov 0  }
   0x2 LB: > { %s32_s16 = sadd.s32 1, %s3874_s14  ;;  %p3111_p0 = scmp.ge.s32.totalorder %s3878_s15, 1  ;;  %s3878_s15 = sphi %s3939_s15, %s20_s15   ;;  %s3874_s14 = sphi %s3937_s14, %s4763_s14   ;;  %s3870_s13 = sphi %s3935_s13, %s4762_s13  }
   0x3   : > { %p34_p1 = scmp.ge.s32.totalorder %s32_s16, 2  ;;  %p355_p2 = scmp.lt.s32.totalorder %s3878_s15, 3 }
   0x5   : > { %s4765_s16 = smov (%p34_p1, %s32_s16), 0  ;;  %p356_p3 = pnand %p3111_p0, %p355_p2 }
   0x7   : > { %359 = sbr.rel (%p356_p3) target bundleno = 1395 (0x573), region = 60 }
   0xc   : > { %v469_v0 = vld [vmem:[%s4750_s1] sm:$0x3]  ;;  %vm503_vm0 = vcmask 1041408   ;;  %p412_p4 = scmp.lt.s32.totalorder %s3870_s13, 1  ;;  %vm490_vm1 = vcmask 31744   ;;  %vm759_vm2 = vcmask 1043456  }
   0xd   : > { %3645 = vmatprep.subr.msk.bf16.mxu0 %vm503_vm0, %v469_v0  ;;  %v505_v1 = vsel %vm503_vm0, %v469_v0, 0  ;;  %v587_v6 = vld [vmem:[%s4753_s4] sm:$0x3]  ;;  %v3999_v9 = vld [vmem:[%s4750_s1 + $0x2] sm:$0x3]  ;;  %v4006_v10 = vld [vmem:[%s4752_s3 + $0x10] sm:$0xff] }
   0xe   : > { %3428 = vmatpush3.bf16.msra.mxu0 %v505_v1  ;;  %s4767_s13 = smov (!%p412_p4, %s3870_s13), 1  ;;  %3646 = vmatprep.subr.msk.bf16.mxu1 %vm503_vm0, %v587_v6  ;;  %v589_v7 = vsel %vm503_vm0, %v587_v6, 0  ;;  %v3985_v8 = vld [vmem:[%s4756_s7] sm:$0xf]  ;;  %v4022_v16 = vld [vmem:[%s4752_s3 + $0x18] sm:$0xff]  ;;  %v4038_v24 = vld [vmem:[%s4752_s3 + $0x8] sm:$0xff] }
   0xf   : > { %s3298_s19 = sshll.u32 %s4767_s13, 7  ;;  %3438 = vmatpush3.bf16.msra.mxu1 %v589_v7  ;;  %3447 = vmatprep.subr.msk.mxu0 %vm759_vm2, %v3985_v8  ;;  %v4011_v12 = vld [vmem:[%s4751_s2] ss:$0 sm:$0xff]  ;;  %v4043_v26 = vld [vmem:[%s4752_s3 + $0x30] sm:$0xff]  ;;  %v4071_v44 = vld [vmem:[%s4752_s3 + $0x38] sm:$0xff]  ;;  %vm2902_vm3 = vcmask 261120  }
  0x10   : > { %s3964_s22 = scalar_lea.vmem %s4749_s0, %s3298_s19  ;;  %3461 = vmatprep.subr.msk.mxu1 %vm759_vm2, %v3985_v8  ;;  %v4016_v13 = vld [vmem:[%s4752_s3] sm:$0xff]  ;;  %v4086_v56 = vld [vmem:[%s4752_s3 + $0x28] sm:$0xff]  ;;  %s3299_s12 = sshll.u32 %s4767_s13, 6 }
  0x11   : > { %v3677_v2 = vld [vmem:[%s3964_s22] sm:$0xff]   ;;  %v3678_v3 = vld [vmem:[%s3964_s22 + $0x8] sm:$0xff]   ;;  %v3679_v4 = vld [vmem:[%s3964_s22 + $0x10] sm:$0xff]   ;;  %s441_s21 = scalar_lea.vmem %s4759_s10, %s3299_s12 }
  0x12   : > { %3429 = vmatprep.mubr.msk.bf16.mxu0 %vm490_vm1, %v3677_v2  ;;  %3439 = vmatprep.mubr.msk.bf16.mxu1 %vm490_vm1, %v3677_v2  ;;  %v3680_v5 = vld [vmem:[%s3964_s22 + $0x18] sm:$0xff]   ;;  %v4055_v34 = vld [vmem:[%s4752_s3 + $0x20] sm:$0xff] }
  0x13   : > { %3430 = vmatmul.mubr.msk.bf16.vlgmr.msra.gmra.mxu0 %vm490_vm1, %v3678_v3  ;;  %3440 = vmatmul.mubr.msk.bf16.vlgmr.msra.gmra.mxu1 %vm490_vm1, %v3678_v3 }
  0x14   : > { %3433 = vmatprep.mubr.msk.bf16.mxu0 %vm490_vm1, %v3679_v4  ;;  %3443 = vmatprep.mubr.msk.bf16.mxu1 %vm490_vm1, %v3679_v4 }
  0x15   : > { %3448 = vmatpush3.msk.msra.mxu0 %vm759_vm2, %v3985_v8  ;;  %3462 = vmatpush3.msk.msra.mxu1 %vm759_vm2, %v3985_v8 }
  0x16   : > { %3647 = vmatprep.subr.msk.bf16.mxu0 %vm503_vm0, %v3999_v9 }
  0x1b   : > { %3434 = vmatmul.mubr.msk.bf16.gmra.mxu0 %vm490_vm1, %v3680_v5  ;;  %3444 = vmatmul.mubr.msk.bf16.gmra.mxu1 %vm490_vm1, %v3680_v5 }
  0xd3   : > { %v3431_v11 = vpop.f32.mrf.mxu0 }
  0xd4   : > { %v550_v14 = vadd.f32 %v3431_v11, %v4006_v10 }
  0xd5   : > { %v541_v15 = vpop.f32.mrf.mxu0 }
  0xd6   : > { %v4025_v17 = vadd.f32 %v4011_v12, %v550_v14  ;;  %v542_v18 = vadd.f32 %v541_v15, %v4016_v13 }
  0xd7   : > { %v3432_v19 = vpop.f32.mrf.mxu0 }
  0xd8   : > { %v673_v20 = vsub.f32 -inf, %v4025_v17  ;;  %v697_v21 = vsub.f32 %v4025_v17, %v4025_v17  ;;  %v4032_v22 = vadd.f32 %v4011_v12, %v542_v18  ;;  %v553_v23 = vadd.f32 %v3432_v19, %v4022_v16 }
  0xd9   : > { %v544_v25 = vpop.f32.mrf.mxu0 }
  0xda   : > { %v683_v27 = vmul.f32 1.442695, %v673_v20  ;;  %v707_v28 = vmul.f32 1.442695, %v697_v21  ;;  %v671_v29 = vsub.f32 -inf, %v4032_v22  ;;  %v695_v30 = vsub.f32 %v4032_v22, %v4032_v22 }
  0xdb   : > { %v4049_v31 = vadd.f32 %v4011_v12, %v553_v23  ;;  %v545_v32 = vadd.f32 %v544_v25, %v4038_v24  ;;  %v3435_v33 = vpop.f32.mrf.mxu0 }
  0xdc   : > { %3695 = vpow2.f32 %v683_v27  ;;  %v679_v35 = vmul.f32 1.442695, %v671_v29  ;;  %v703_v36 = vmul.f32 1.442695, %v695_v30  ;;  %v566_v37 = vadd.f32 %v3435_v33, %v4043_v26 }
  0xdd   : > { %3697 = vpow2.f32 %v707_v28  ;;  %v674_v38 = vsub.f32 -inf, %v4049_v31  ;;  %v698_v39 = vsub.f32 %v4049_v31, %v4049_v31  ;;  %v4062_v40 = vadd.f32 %v4011_v12, %v545_v32  ;;  %v557_v41 = vpop.f32.mrf.mxu0 }
  0xde   : > { %3699 = vpow2.f32 %v679_v35  ;;  %v4065_v42 = vadd.f32 %v4011_v12, %v566_v37  ;;  %v558_v43 = vadd.f32 %v557_v41, %v4055_v34  ;;  %v1065_v30 = vsel %vm503_vm0, %v3999_v9, 0 }
  0xdf   : > { %3701 = vpow2.f32 %v703_v36  ;;  %v685_v45 = vmul.f32 1.442695, %v674_v38  ;;  %v709_v46 = vmul.f32 1.442695, %v698_v39  ;;  %v672_v47 = vsub.f32 -inf, %v4062_v40  ;;  %v3436_v48 = vpop.f32.mrf.mxu0 }
  0xe0   : > { %v696_v49 = vsub.f32 %v4062_v40, %v4062_v40  ;;  %v677_v50 = vsub.f32 -inf, %v4065_v42  ;;  %v701_v51 = vsub.f32 %v4065_v42, %v4065_v42  ;;  %v4080_v52 = vadd.f32 %v4011_v12, %v558_v43 }
  0xe1   : > { %3703 = vpow2.f32 %v685_v45  ;;  %v681_v53 = vmul.f32 1.442695, %v672_v47  ;;  %v569_v54 = vadd.f32 %v3436_v48, %v4071_v44  ;;  %v560_v55 = vpop.f32.mrf.mxu0 }
  0xe2   : > { %3705 = vpow2.f32 %v709_v46  ;;  %v705_v57 = vmul.f32 1.442695, %v696_v49  ;;  %v691_v58 = vmul.f32 1.442695, %v677_v50  ;;  %v715_v59 = vmul.f32 1.442695, %v701_v51 }
  0xe3   : > { %3707 = vpow2.f32 %v681_v53  ;;  %v675_v60 = vsub.f32 -inf, %v4080_v52  ;;  %v699_v61 = vsub.f32 %v4080_v52, %v4080_v52  ;;  %v4092_v62 = vadd.f32 %v4011_v12, %v569_v54 }
  0xe4   : > { %3709 = vpow2.f32 %v705_v57  ;;  %v561_v63 = vadd.f32 %v560_v55, %v4086_v56 }
  0xe5   : > { %3711 = vpow2.f32 %v691_v58  ;;  %v687_v0 = vmul.f32 1.442695, %v675_v60  ;;  %v711_v1 = vmul.f32 1.442695, %v699_v61  ;;  %v678_v2 = vsub.f32 -inf, %v4092_v62  ;;  %v3681_v58 = vld [vmem:[%s3964_s22 + $0x20] sm:$0xff]  }
  0xe6   : > { %3713 = vpow2.f32 %v715_v59  ;;  %v702_v3 = vsub.f32 %v4092_v62, %v4092_v62  ;;  %v4099_v4 = vadd.f32 %v4011_v12, %v561_v63  ;;  %v3682_v60 = vld [vmem:[%s3964_s22 + $0x28] sm:$0xff]   ;;  %v3683_v61 = vld [vmem:[%s3964_s22 + $0x30] sm:$0xff]   ;;  %v3684_v63 = vld [vmem:[%s3964_s22 + $0x38] sm:$0xff]  }
  0xe7   : > { %3715 = vpow2.f32 %v687_v0  ;;  %v693_v5 = vmul.f32 1.442695, %v678_v2  ;;  %v3167_v0 = vld [vmem:[%s4753_s4 + $0x2] sm:$0x3]  ;;  %v4166_v2 = vld [vmem:[%s4750_s1 + $0x4] sm:$0x3] }
  0xe8   : > { %3717 = vpow2.f32 %v711_v1  ;;  %v717_v6 = vmul.f32 1.442695, %v702_v3  ;;  %v676_v7 = vsub.f32 -inf, %v4099_v4  ;;  %v700_v11 = vsub.f32 %v4099_v4, %v4099_v4  ;;  %3648 = vmatprep.subr.msk.bf16.mxu1 %vm503_vm0, %v3167_v0  ;;  %v3441_v3 = vpop.f32.mrf.mxu1 }
  0xe9   : > { %v3696_v14 = vpop.eup %3695  ;;  %3719 = vpow2.f32 %v693_v5  ;;  %v1151_v1 = vsel %vm503_vm0, %v3167_v0, 0 }
  0xea   : > { %v3698_v15 = vpop.eup %3697  ;;  %v689_v18 = vmul.f32 1.442695, %v676_v7  ;;  %v713_v19 = vmul.f32 1.442695, %v700_v11  ;;  %v721_v20 = vmul.f32 0.0, %v3696_v14  ;;  %3721 = vpow2.f32 %v717_v6  ;;  %v625_v5 = vpop.f32.mrf.mxu1 }
  0xeb   : > { %v3700_v21 = vpop.eup %3699 }
  0xec   : > { %v3702_v23 = vpop.eup %3701  ;;  %3723 = vpow2.f32 %v689_v18  ;;  %3449 = vmatprep.mubr.msk.f32.mxu0 %vm490_vm1, %v3700_v21  ;;  %v4105_v12 = vadd.f32 %v3698_v15, %v721_v20  ;;  %v719_v25 = vmul.f32 0.0, %v3700_v21  ;;  %v3442_v6 = vpop.f32.mrf.mxu1  ;;  %v4178_v18 = vld [vmem:[%s4755_s6] sm:$0xff]  ;;  %v4184_v21 = vld [vmem:[%s4755_s6 + $0x18] sm:$0xff] }
  0xed   : > { %3725 = vpow2.f32 %v713_v19  ;;  %3463 = vmatprep.mubr.msk.f32.mxu1 %vm490_vm1, %v3702_v23 }
  0xee   : > { %v3704_v27 = vpop.eup %3703  ;;  %v4108_v28 = vadd.f32 %v3702_v23, %v719_v25  ;;  %v628_v7 = vpop.f32.mrf.mxu1  ;;  %v3129_v23 = vld [vmem:[%s4754_s5] ss:$0 sm:$0xff]  ;;  %v626_v25 = vadd.f32 %v625_v5, %v4178_v18 }
  0xef   : > { %v3706_v29 = vpop.eup %3705  ;;  %v722_v32 = vmul.f32 0.0, %v3704_v27 }
  0xf0   : > { %v3708_v33 = vpop.eup %3707  ;;  %v3445_v11 = vpop.f32.mrf.mxu1 }
  0xf1   : > { %v3710_v35 = vpop.eup %3709  ;;  %3450 = vmatmul.mubr.msk.f32.vlgmr.msra.gmra.mxu0 %vm490_vm1, %v3708_v33  ;;  %v4113_v36 = vadd.f32 %v3706_v29, %v722_v32  ;;  %v720_v37 = vmul.f32 0.0, %v3708_v33 }
  0xf2   : > { %v3712_v38 = vpop.eup %3711  ;;  %3464 = vmatmul.mubr.msk.f32.vlgmr.msra.gmra.mxu1 %vm490_vm1, %v3710_v35  ;;  %3476 = vmatpush3.bf16.msra.mxu0 %v1065_v30  ;;  %v637_v30 = vadd.f32 %v3442_v6, %v4184_v21 }
  0xf3   : > { %v3714_v39 = vpop.eup %3713  ;;  %3452 = vmatprep.mubr.msk.f32.mxu0 %vm490_vm1, %v3696_v14  ;;  %3466 = vmatprep.mubr.msk.f32.mxu1 %vm490_vm1, %v3698_v15  ;;  %v4118_v41 = vadd.f32 %v3710_v35, %v720_v37  ;;  %v725_v9 = vmul.f32 0.0, %v3712_v38  ;;  %v641_v14 = vpop.f32.mrf.mxu1  ;;  %v4173_v15 = vld [vmem:[%s4755_s6 + $0x8] sm:$0xff] }
  0xf4   : > { %v3716_v43 = vpop.eup %3715  ;;  %3495 = vmatprep.subr.msk.mxu0 %vm759_vm2, %v3985_v8  ;;  %3486 = vmatpush3.bf16.msra.mxu1 %v1151_v1  ;;  %v629_v20 = vadd.f32 %v628_v7, %v4173_v15  ;;  %v4200_v35 = vld [vmem:[%s4755_s6 + $0x28] sm:$0xff] }
  0xf5   : > { %v3718_v45 = vpop.eup %3717  ;;  %3453 = vmatmul.mubr.msk.f32.gmra.mxu0 %vm490_vm1, %v3704_v27  ;;  %v4123_v46 = vadd.f32 %v3714_v39, %v725_v9  ;;  %v723_v47 = vmul.f32 0.0, %v3716_v43  ;;  %3509 = vmatprep.subr.msk.mxu1 %vm759_vm2, %v3985_v8  ;;  %v3446_v19 = vpop.f32.mrf.mxu1  ;;  %v4193_v27 = vld [vmem:[%s4755_s6 + $0x10] sm:$0xff] }
  0xf6   : > { %v3720_v48 = vpop.eup %3719  ;;  %3467 = vmatmul.mubr.msk.f32.gmra.mxu1 %vm490_vm1, %v3706_v29  ;;  %3455 = vmatprep.mubr.msk.f32.mxu0 %vm490_vm1, %v3716_v43  ;;  %v664_v32 = vadd.f32 %v3129_v23, %v629_v20  ;;  %v634_v33 = vadd.f32 %v3441_v3, %v4193_v27  ;;  %v4205_v43 = vld [vmem:[%s4755_s6 + $0x20] sm:$0xff]  ;;  %v4219_v3 = vld [vmem:[%s4755_s6 + $0x30] sm:$0xff] }
  0xf7   : > { %3469 = vmatprep.mubr.msk.f32.mxu1 %vm490_vm1, %v3718_v45  ;;  %v4128_v49 = vadd.f32 %v3718_v45, %v723_v47  ;;  %v726_v50 = vmul.f32 0.0, %v3720_v48  ;;  %v3722_v51 = vpop.eup %3721  ;;  %v644_v29 = vpop.f32.mrf.mxu1 }
  0xf9   : > { %v3724_v53 = vpop.eup %3723  ;;  %v4130_v54 = vadd.f32 %v3722_v51, %v726_v50  ;;  %v645_v50 = vadd.f32 %v644_v29, %v4200_v35 }
  0xfa   : > { %v3726_v55 = vpop.eup %3725  ;;  %3456 = vmatmul.mubr.msk.f32.gmra.mxu0 %vm490_vm1, %v3724_v53  ;;  %v724_v57 = vmul.f32 0.0, %v3724_v53 }
  0xfb   : > { %3470 = vmatmul.mubr.msk.f32.gmra.mxu1 %vm490_vm1, %v3726_v55  ;;  %3458 = vmatprep.mubr.msk.f32.mxu0 %vm490_vm1, %v3712_v38  ;;  %v663_v38 = vadd.f32 %v3129_v23, %v626_v25 }
  0xfc   : > { %3472 = vmatprep.mubr.msk.f32.mxu1 %vm490_vm1, %v3714_v39  ;;  %v4137_v59 = vadd.f32 %v3726_v55, %v724_v57  ;;  %v4211_v55 = vld [vmem:[%s4755_s6 + $0x38] sm:$0xff] }
  0xfd   : > { %v653_v20 = vadd.f32 %v3446_v19, %v4211_v55 }
  0xfe   : > { %3459 = vmatmul.mubr.msk.f32.gmra.mxu0 %vm490_vm1, %v3720_v48  ;;  %v666_v48 = vadd.f32 %v3129_v23, %v637_v30  ;;  %v668_v30 = vadd.f32 %v3129_v23, %v645_v50 }
  0xff   : > { %3473 = vmatmul.mubr.msk.f32.gmra.mxu1 %vm490_vm1, %v3722_v51  ;;  %3477 = vmatprep.mubr.msk.bf16.mxu0 %vm490_vm1, %v3681_v58 }
 0x100   : > { %3487 = vmatprep.mubr.msk.bf16.mxu1 %vm490_vm1, %v3681_v58 }
 0x102   : > { %3478 = vmatmul.mubr.msk.bf16.vlgmr.msra.gmra.mxu0 %vm490_vm1, %v3682_v60 }
 0x103   : > { %3481 = vmatprep.mubr.msk.bf16.mxu0 %vm490_vm1, %v3683_v61  ;;  %3496 = vmatpush3.msk.msra.mxu0 %vm759_vm2, %v3985_v8 }
 0x104   : > { %3488 = vmatmul.mubr.msk.bf16.vlgmr.msra.gmra.mxu1 %vm490_vm1, %v3682_v60  ;;  %3649 = vmatprep.subr.msk.bf16.mxu0 %vm503_vm0, %v4166_v2  ;;  %v665_v60 = vadd.f32 %v3129_v23, %v634_v33 }
 0x105   : > { %3491 = vmatprep.mubr.msk.bf16.mxu1 %vm490_vm1, %v3683_v61  ;;  %3510 = vmatpush3.msk.msra.mxu1 %vm759_vm2, %v3985_v8 }
 0x10a   : > { %3482 = vmatmul.mubr.msk.bf16.gmra.mxu0 %vm490_vm1, %v3684_v63 }
 0x10c   : > { %3492 = vmatmul.mubr.msk.bf16.gmra.mxu1 %vm490_vm1, %v3684_v63  ;;  %v642_v63 = vadd.f32 %v641_v14, %v4205_v43  ;;  %v650_v14 = vadd.f32 %v3445_v11, %v4219_v3 }
 0x1b1   : > { %v3451_v37 = vpop.f32.mrf.mxu0 }
 0x1b2   : > { %v998_v39 = vmul.f32 0.0, %v3451_v37  ;;  %v3465_v9 = vpop.f32.mrf.mxu1 }
 0x1b3   : > { %v1006_v45 = vmul.f32 %v3465_v9, %v664_v32  ;;  %v829_v47 = vpop.f32.mrf.mxu0 }
 0x1b4   : > { %v997_v51 = vmul.f32 0.0, %v829_v47  ;;  %v958_v53 = vpop.f32.mrf.mxu1 }
 0x1b5   : > { %v1005_v57 = vmul.f32 %v958_v53, %v663_v38  ;;  %v3454_v58 = vpop.f32.mrf.mxu0  ;;  %v4213_v61 = vadd.f32 %v1006_v45, %v998_v39  ;;  %v667_v38 = vadd.f32 %v3129_v23, %v642_v63 }
 0x1b6   : > { %v1000_v0 = vmul.f32 0.0, %v3454_v58  ;;  %v3468_v1 = vpop.f32.mrf.mxu1 }
 0x1b7   : > { %v1008_v5 = vmul.f32 %v3468_v1, %v666_v48  ;;  %v839_v6 = vpop.f32.mrf.mxu0  ;;  %v4221_v7 = vadd.f32 %v1005_v57, %v997_v51  ;;  %v670_v51 = vadd.f32 %v3129_v23, %v653_v20  ;;  %v669_v1 = vadd.f32 %v3129_v23, %v650_v14  ;;  %v3166_v20 = vld [vmem:[%s4751_s2 + $0x1] ss:$0 sm:$0xff] }
 0x1b8   : > { %v999_v25 = vmul.f32 0.0, %v839_v6  ;;  %v968_v29 = vpop.f32.mrf.mxu1 }
 0x1b9   : > { %v1007_v32 = vmul.f32 %v968_v29, %v665_v60  ;;  %v4224_v33 = vadd.f32 %v1008_v5, %v1000_v0 }
 0x1ba   : > { %v3457_v37 = vpop.f32.mrf.mxu0 }
 0x1bb   : > { %v1002_v39 = vmul.f32 0.0, %v3457_v37  ;;  %v3471_v9 = vpop.f32.mrf.mxu1  ;;  %v4227_v45 = vadd.f32 %v1007_v32, %v999_v25 }
 0x1bc   : > { %v1010_v47 = vmul.f32 %v3471_v9, %v668_v30  ;;  %v849_v48 = vpop.f32.mrf.mxu0 }
 0x1bd   : > { %v1001_v53 = vmul.f32 0.0, %v849_v48  ;;  %v978_v57 = vpop.f32.mrf.mxu1 }
 0x1be   : > { %v1009_v19 = vmul.f32 %v978_v57, %v667_v38  ;;  %v3460_v58 = vpop.f32.mrf.mxu0  ;;  %v4229_v50 = vadd.f32 %v1010_v47, %v1002_v39 }
 0x1bf   : > { %v1004_v60 = vmul.f32 0.0, %v3460_v58  ;;  %v3474_v0 = vpop.f32.mrf.mxu1 }
 0x1c0   : > { %v1012_v5 = vmul.f32 %v3474_v0, %v670_v51  ;;  %v859_v11 = vpop.f32.mrf.mxu0  ;;  %v4231_v6 = vadd.f32 %v1009_v19, %v1001_v53 }
 0x1c1   : > { %v1003_v63 = vmul.f32 0.0, %v859_v11  ;;  %v988_v29 = vpop.f32.mrf.mxu1 }
 0x1c2   : > { %v1011_v25 = vmul.f32 %v988_v29, %v669_v1  ;;  %v3479_v32 = vpop.f32.mrf.mxu0  ;;  %v4236_v30 = vadd.f32 %v1012_v5, %v1004_v60 }
 0x1c3   : > { %v1110_v23 = vadd.f32 %v3479_v32, %v4006_v10 }
 0x1c4   : > { %v1101_v14 = vpop.f32.mrf.mxu0  ;;  %v4239_v37 = vadd.f32 %v1011_v25, %v1003_v63 }
 0x1c5   : > { %v1142_v38 = vadd.f32 %v3166_v20, %v1110_v23  ;;  %v1102_v39 = vadd.f32 %v1101_v14, %v4016_v13 }
 0x1c6   : > { %v3480_v9 = vpop.f32.mrf.mxu0 }
 0x1c7   : > { %v4243_v47 = vmax.f32 %v4025_v17, %v1142_v38  ;;  %v1140_v48 = vadd.f32 %v3166_v20, %v1102_v39  ;;  %v1113_v51 = vadd.f32 %v3480_v9, %v4022_v16 }
 0x1c8   : > { %v1104_v53 = vpop.f32.mrf.mxu0 }
 0x1c9   : > { %v1244_v57 = vsub.f32 %v4025_v17, %v4243_v47  ;;  %v1268_v19 = vsub.f32 %v1142_v38, %v4243_v47  ;;  %v4250_v58 = vmax.f32 %v4032_v22, %v1140_v48  ;;  %v1143_v1 = vadd.f32 %v3166_v20, %v1113_v51 }
 0x1ca   : > { %v1105_v60 = vadd.f32 %v1104_v53, %v4038_v24  ;;  %v3483_v0 = vpop.f32.mrf.mxu0 }
 0x1cb   : > { %v1254_v5 = vmul.f32 1.442695, %v1244_v57  ;;  %v1278_v11 = vmul.f32 1.442695, %v1268_v19  ;;  %v1242_v63 = vsub.f32 %v4032_v22, %v4250_v58  ;;  %v1266_v29 = vsub.f32 %v1140_v48, %v4250_v58 }
 0x1cc   : > { %v4257_v25 = vmax.f32 %v4049_v31, %v1143_v1  ;;  %v1141_v17 = vadd.f32 %v3166_v20, %v1105_v60  ;;  %v1126_v32 = vadd.f32 %v3483_v0, %v4043_v26  ;;  %v1117_v23 = vpop.f32.mrf.mxu0 }
 0x1cd   : > { %3727 = vpow2.f32 %v1254_v5  ;;  %v1250_v14 = vmul.f32 1.442695, %v1242_v63  ;;  %v1274_v38 = vmul.f32 1.442695, %v1266_v29  ;;  %v1118_v39 = vadd.f32 %v1117_v23, %v4055_v34 }
 0x1ce   : > { %3729 = vpow2.f32 %v1278_v11  ;;  %v1245_v9 = vsub.f32 %v4049_v31, %v4257_v25  ;;  %v1269_v22 = vsub.f32 %v1143_v1, %v4257_v25  ;;  %v4265_v48 = vmax.f32 %v4062_v40, %v1141_v17  ;;  %v3484_v51 = vpop.f32.mrf.mxu0 }
 0x1cf   : > { %3731 = vpow2.f32 %v1250_v14  ;;  %v1146_v53 = vadd.f32 %v3166_v20, %v1126_v32  ;;  %v1144_v57 = vadd.f32 %v3166_v20, %v1118_v39  ;;  %v1129_v19 = vadd.f32 %v3484_v51, %v4071_v44 }
 0x1d0   : > { %3733 = vpow2.f32 %v1274_v38  ;;  %v1256_v60 = vmul.f32 1.442695, %v1245_v9  ;;  %v1280_v0 = vmul.f32 1.442695, %v1269_v22  ;;  %v1243_v5 = vsub.f32 %v4062_v40, %v4265_v48  ;;  %v1120_v11 = vpop.f32.mrf.mxu0 }
 0x1d1   : > { %v1267_v31 = vsub.f32 %v1141_v17, %v4265_v48  ;;  %v4272_v1 = vmax.f32 %v4065_v42, %v1146_v53  ;;  %v4275_v63 = vmax.f32 %v4080_v52, %v1144_v57  ;;  %v1147_v29 = vadd.f32 %v3166_v20, %v1129_v19 }
 0x1d2   : > { %3735 = vpow2.f32 %v1256_v60  ;;  %v1252_v32 = vmul.f32 1.442695, %v1243_v5  ;;  %v1121_v23 = vadd.f32 %v1120_v11, %v4086_v56 }
 0x1d3   : > { %3737 = vpow2.f32 %v1280_v0  ;;  %v1276_v14 = vmul.f32 1.442695, %v1267_v31  ;;  %v1248_v38 = vsub.f32 %v4065_v42, %v4272_v1  ;;  %v1272_v40 = vsub.f32 %v1146_v53, %v4272_v1 }
 0x1d4   : > { %3739 = vpow2.f32 %v1252_v32  ;;  %v1246_v17 = vsub.f32 %v4080_v52, %v4275_v63  ;;  %v1270_v39 = vsub.f32 %v1144_v57, %v4275_v63  ;;  %v4285_v9 = vmax.f32 %v4092_v62, %v1147_v29 }
 0x1d5   : > { %3741 = vpow2.f32 %v1276_v14  ;;  %v1262_v22 = vmul.f32 1.442695, %v1248_v38  ;;  %v1286_v51 = vmul.f32 1.442695, %v1272_v40  ;;  %v1145_v19 = vadd.f32 %v3166_v20, %v1121_v23 }
 0x1d6   : > { %v1258_v60 = vmul.f32 1.442695, %v1246_v17  ;;  %v1282_v0 = vmul.f32 1.442695, %v1270_v39  ;;  %v1249_v42 = vsub.f32 %v4092_v62, %v4285_v9  ;;  %v1273_v53 = vsub.f32 %v1147_v29, %v4285_v9 }
 0x1d7   : > { %3743 = vpow2.f32 %v1262_v22  ;;  %v4291_v5 = vmax.f32 %v4099_v4, %v1145_v19 }
 0x1d8   : > { %3745 = vpow2.f32 %v1286_v51  ;;  %v1264_v52 = vmul.f32 1.442695, %v1249_v42  ;;  %v1288_v57 = vmul.f32 1.442695, %v1273_v53  ;;  %v1632_v51 = vsel %vm503_vm0, %v4166_v2, 0 }
 0x1d9   : > { %3747 = vpow2.f32 %v1258_v60  ;;  %v1247_v11 = vsub.f32 %v4099_v4, %v4291_v5  ;;  %v1271_v20 = vsub.f32 %v1145_v19, %v4291_v5 }
 0x1da   : > { %v3728_v31 = vpop.eup %3727  ;;  %3749 = vpow2.f32 %v1282_v0 }
 0x1db   : > { %v3730_v32 = vpop.eup %3729  ;;  %v1292_v62 = vmul.f32 %v3728_v31, %v4105_v12  ;;  %3751 = vpow2.f32 %v1264_v52  ;;  %v1260_v29 = vmul.f32 1.442695, %v1247_v11  ;;  %v1284_v23 = vmul.f32 1.442695, %v1271_v20 }
 0x1dc   : > { %v3732_v14 = vpop.eup %3731  ;;  %3753 = vpow2.f32 %v1288_v57 }
 0x1dd   : > { %v3734_v38 = vpop.eup %3733  ;;  %v4297_v40 = vadd.f32 %v3730_v32, %v1292_v62  ;;  %v1290_v17 = vmul.f32 %v3732_v14, %v4108_v28  ;;  %3755 = vpow2.f32 %v1260_v29  ;;  %3497 = vmatprep.mubr.msk.f32.mxu0 %vm490_vm1, %v3732_v14  ;;  %v3685_v14 = vld [vmem:[%s3964_s22 + $0x40] sm:$0xff]  }
 0x1de   : > { %3757 = vpow2.f32 %v1284_v23  ;;  %3511 = vmatprep.mubr.msk.f32.mxu1 %vm490_vm1, %v3734_v38 }
 0x1df   : > { %v3736_v4 = vpop.eup %3735  ;;  %v4302_v39 = vadd.f32 %v3734_v38, %v1290_v17  ;;  %v3688_v17 = vld [vmem:[%s3964_s22 + $0x58] sm:$0xff]  }
 0x1e0   : > { %v3738_v12 = vpop.eup %3737  ;;  %v1293_v22 = vmul.f32 %v3736_v4, %v4113_v36 }
 0x1e1   : > { %v3740_v19 = vpop.eup %3739 }
 0x1e2   : > { %v3742_v60 = vpop.eup %3741  ;;  %v4307_v0 = vadd.f32 %v3738_v12, %v1293_v22  ;;  %v1291_v28 = vmul.f32 %v3740_v19, %v4118_v41  ;;  %3498 = vmatmul.mubr.msk.f32.vlgmr.msra.gmra.mxu0 %vm490_vm1, %v3740_v19  ;;  %v4366_v22 = vld [vmem:[%s4750_s1 + $0x6] sm:$0x3] }
 0x1e3   : > { %3512 = vmatmul.mubr.msk.f32.vlgmr.msra.gmra.mxu1 %vm490_vm1, %v3742_v60  ;;  %3524 = vmatpush3.bf16.msra.mxu0 %v1632_v51  ;;  %v3489_v51 = vpop.f32.mrf.mxu1 }
 0x1e4   : > { %v3744_v42 = vpop.eup %3743  ;;  %v4312_v53 = vadd.f32 %v3742_v60, %v1291_v28  ;;  %3500 = vmatprep.mubr.msk.f32.mxu0 %vm490_vm1, %v3728_v31  ;;  %3514 = vmatprep.mubr.msk.f32.mxu1 %vm490_vm1, %v3730_v32 }
 0x1e5   : > { %v3746_v36 = vpop.eup %3745  ;;  %v1296_v2 = vmul.f32 %v3744_v42, %v4123_v46  ;;  %3543 = vmatprep.subr.msk.mxu0 %vm759_vm2, %v3985_v8  ;;  %v1187_v19 = vpop.f32.mrf.mxu1 }
 0x1e6   : > { %v3748_v52 = vpop.eup %3747  ;;  %3501 = vmatmul.mubr.msk.f32.gmra.mxu0 %vm490_vm1, %v3736_v4  ;;  %v3211_v4 = vld [vmem:[%s4753_s4 + $0x4] sm:$0x3] }
 0x1e7   : > { %v3750_v41 = vpop.eup %3749  ;;  %v4320_v57 = vadd.f32 %v3746_v36, %v1296_v2  ;;  %v1294_v11 = vmul.f32 %v3748_v52, %v4128_v49  ;;  %3515 = vmatmul.mubr.msk.f32.gmra.mxu1 %vm490_vm1, %v3738_v12  ;;  %3503 = vmatprep.mubr.msk.f32.mxu0 %vm490_vm1, %v3748_v52  ;;  %v1718_v12 = vsel %vm503_vm0, %v3211_v4, 0  ;;  %v3490_v60 = vpop.f32.mrf.mxu1 }
 0x1e8   : > { %v3752_v20 = vpop.eup %3751  ;;  %3517 = vmatprep.mubr.msk.f32.mxu1 %vm490_vm1, %v3750_v41  ;;  %3650 = vmatprep.subr.msk.bf16.mxu1 %vm503_vm0, %v3211_v4 }
 0x1e9   : > { %v3754_v46 = vpop.eup %3753  ;;  %v4326_v31 = vadd.f32 %v3750_v41, %v1294_v11  ;;  %v1297_v32 = vmul.f32 %v3752_v20, %v4130_v54  ;;  %v3686_v54 = vld [vmem:[%s3964_s22 + $0x48] sm:$0xff]   ;;  %3534 = vmatpush3.bf16.msra.mxu1 %v1718_v12  ;;  %v1190_v28 = vpop.f32.mrf.mxu1  ;;  %v1188_v41 = vadd.f32 %v1187_v19, %v4178_v18 }
 0x1ea   : > { %v3756_v62 = vpop.eup %3755  ;;  %3557 = vmatprep.subr.msk.mxu1 %vm759_vm2, %v3985_v8  ;;  %v1191_v52 = vadd.f32 %v1190_v28, %v4173_v15 }
 0x1eb   : > { %v3758_v29 = vpop.eup %3757  ;;  %v4329_v23 = vadd.f32 %v3754_v46, %v1297_v32  ;;  %v1295_v49 = vmul.f32 %v3756_v62, %v4137_v59  ;;  %3504 = vmatmul.mubr.msk.f32.gmra.mxu0 %vm490_vm1, %v3756_v62  ;;  %v3687_v59 = vld [vmem:[%s3964_s22 + $0x50] sm:$0xff]   ;;  %v1196_v32 = vadd.f32 %v3489_v51, %v4193_v27 }
 0x1ec   : > { %3518 = vmatmul.mubr.msk.f32.gmra.mxu1 %vm490_vm1, %v3758_v29  ;;  %3506 = vmatprep.mubr.msk.f32.mxu0 %vm490_vm1, %v3744_v42  ;;  %v3493_v42 = vpop.f32.mrf.mxu1 }
 0x1ed   : > { %v4336_v38 = vadd.f32 %v3758_v29, %v1295_v49  ;;  %3520 = vmatprep.mubr.msk.f32.mxu1 %vm490_vm1, %v3746_v36 }
 0x1ee   : > { %v1203_v36 = vpop.f32.mrf.mxu1 }
 0x1ef   : > { %3507 = vmatmul.mubr.msk.f32.gmra.mxu0 %vm490_vm1, %v3752_v20  ;;  %v1199_v20 = vadd.f32 %v3490_v60, %v4184_v21  ;;  %v1204_v27 = vadd.f32 %v1203_v36, %v4205_v43 }
 0x1f0   : > { %3521 = vmatmul.mubr.msk.f32.gmra.mxu1 %vm490_vm1, %v3754_v46  ;;  %3525 = vmatprep.mubr.msk.bf16.mxu0 %vm490_vm1, %v3685_v14  ;;  %v3494_v2 = vpop.f32.mrf.mxu1 }
 0x1f1   : > { %3535 = vmatprep.mubr.msk.bf16.mxu1 %vm490_vm1, %v3685_v14 }
 0x1f2   : > { %v1206_v11 = vpop.f32.mrf.mxu1 }
 0x1f3   : > { %3526 = vmatmul.mubr.msk.bf16.vlgmr.msra.gmra.mxu0 %vm490_vm1, %v3686_v54 }
 0x1f4   : > { %3529 = vmatprep.mubr.msk.bf16.mxu0 %vm490_vm1, %v3687_v59  ;;  %3544 = vmatpush3.msk.msra.mxu0 %vm759_vm2, %v3985_v8 }
 0x1f5   : > { %3536 = vmatmul.mubr.msk.bf16.vlgmr.msra.gmra.mxu1 %vm490_vm1, %v3686_v54  ;;  %3651 = vmatprep.subr.msk.bf16.mxu0 %vm503_vm0, %v4366_v22 }
 0x1f6   : > { %3539 = vmatprep.mubr.msk.bf16.mxu1 %vm490_vm1, %v3687_v59  ;;  %3558 = vmatpush3.msk.msra.mxu1 %vm759_vm2, %v3985_v8  ;;  %v3173_v8 = vld [vmem:[%s4754_s5 + $0x1] ss:$0 sm:$0xff] }
 0x1f7   : > { %v1227_v46 = vadd.f32 %v3173_v8, %v1191_v52  ;;  %v1226_v29 = vadd.f32 %v3173_v8, %v1188_v41  ;;  %v1229_v15 = vadd.f32 %v3173_v8, %v1199_v20  ;;  %v1228_v28 = vadd.f32 %v3173_v8, %v1196_v32 }
 0x1f8   : > { %v1215_v20 = vadd.f32 %v3494_v2, %v4211_v55  ;;  %v1212_v32 = vadd.f32 %v3493_v42, %v4219_v3  ;;  %v1230_v43 = vadd.f32 %v3173_v8, %v1204_v27 }
 0x1fb   : > { %3530 = vmatmul.mubr.msk.bf16.gmra.mxu0 %vm490_vm1, %v3688_v17 }
 0x1fd   : > { %3540 = vmatmul.mubr.msk.bf16.gmra.mxu1 %vm490_vm1, %v3688_v17  ;;  %v1207_v17 = vadd.f32 %v1206_v11, %v4200_v35 }
 0x1ff   : > { %v1231_v11 = vadd.f32 %v3173_v8, %v1207_v17  ;;  %v1232_v17 = vadd.f32 %v3173_v8, %v1212_v32 }
 0x2a2   : > { %v3499_v62 = vpop.f32.mrf.mxu0 }
 0x2a3   : > { %v1565_v49 = vmul.f32 %v3499_v62, %v4213_v61  ;;  %v3513_v14 = vpop.f32.mrf.mxu1 }
 0x2a4   : > { %v1573_v54 = vmul.f32 %v3513_v14, %v1227_v46  ;;  %v1396_v59 = vpop.f32.mrf.mxu0 }
 0x2a5   : > { %v1564_v4 = vmul.f32 %v1396_v59, %v4221_v7  ;;  %v1525_v12 = vpop.f32.mrf.mxu1  ;;  %v1233_v59 = vadd.f32 %v3173_v8, %v1215_v20 }
 0x2a6   : > { %v1572_v18 = vmul.f32 %v1525_v12, %v1226_v29  ;;  %v3502_v19 = vpop.f32.mrf.mxu0  ;;  %v4380_v21 = vadd.f32 %v1573_v54, %v1565_v49 }
 0x2a7   : > { %v1567_v51 = vmul.f32 %v3502_v19, %v4224_v33  ;;  %v3516_v60 = vpop.f32.mrf.mxu1 }
 0x2a8   : > { %v1575_v61 = vmul.f32 %v3516_v60, %v1229_v15  ;;  %v1406_v52 = vpop.f32.mrf.mxu0  ;;  %v4384_v41 = vadd.f32 %v1572_v18, %v1564_v4 }
 0x2a9   : > { %v1566_v35 = vmul.f32 %v1406_v52, %v4227_v45  ;;  %v1535_v7 = vpop.f32.mrf.mxu1 }
 0x2aa   : > { %v1574_v46 = vmul.f32 %v1535_v7, %v1228_v28  ;;  %v4388_v62 = vadd.f32 %v1575_v61, %v1567_v51 }
 0x2ab   : > { %v3505_v29 = vpop.f32.mrf.mxu0 }
 0x2ac   : > { %v1569_v33 = vmul.f32 %v3505_v29, %v4229_v50  ;;  %v3519_v36 = vpop.f32.mrf.mxu1  ;;  %v4392_v49 = vadd.f32 %v1574_v46, %v1566_v35 }
 0x2ad   : > { %v1577_v14 = vmul.f32 %v3519_v36, %v1231_v11  ;;  %v1416_v54 = vpop.f32.mrf.mxu0 }
 0x2ae   : > { %v1568_v55 = vmul.f32 %v1416_v54, %v4231_v6  ;;  %v1545_v45 = vpop.f32.mrf.mxu1  ;;  %v3210_v6 = vld [vmem:[%s4751_s2 + $0x2] ss:$0 sm:$0xff] }
 0x2af   : > { %v1576_v2 = vmul.f32 %v1545_v45, %v1230_v43  ;;  %v3508_v15 = vpop.f32.mrf.mxu0  ;;  %v4395_v4 = vadd.f32 %v1577_v14, %v1569_v33 }
 0x2b0   : > { %v1571_v3 = vmul.f32 %v3508_v15, %v4236_v30  ;;  %v3522_v42 = vpop.f32.mrf.mxu1 }
 0x2b1   : > { %v1579_v12 = vmul.f32 %v3522_v42, %v1233_v59  ;;  %v1426_v18 = vpop.f32.mrf.mxu0  ;;  %v4398_v50 = vadd.f32 %v1576_v2, %v1568_v55 }
 0x2b2   : > { %v1570_v19 = vmul.f32 %v1426_v18, %v4239_v37  ;;  %v1555_v28 = vpop.f32.mrf.mxu1 }
 0x2b3   : > { %v1578_v27 = vmul.f32 %v1555_v28, %v1232_v17  ;;  %v3527_v51 = vpop.f32.mrf.mxu0  ;;  %v4404_v60 = vadd.f32 %v1579_v12, %v1571_v3 }
 0x2b4   : > { %v1677_v8 = vadd.f32 %v3527_v51, %v4006_v10 }
 0x2b5   : > { %v1668_v61 = vpop.f32.mrf.mxu0  ;;  %v4407_v30 = vadd.f32 %v1578_v27, %v1570_v19 }
 0x2b6   : > { %v1709_v52 = vadd.f32 %v3210_v6, %v1677_v8  ;;  %v1669_v20 = vadd.f32 %v1668_v61, %v4016_v13 }
 0x2b7   : > { %v3528_v35 = vpop.f32.mrf.mxu0 }
 0x2b8   : > { %v4411_v37 = vmax.f32 %v4243_v47, %v1709_v52  ;;  %v1707_v7 = vadd.f32 %v3210_v6, %v1669_v20  ;;  %v1680_v11 = vadd.f32 %v3528_v35, %v4022_v16 }
 0x2b9   : > { %v1671_v46 = vpop.f32.mrf.mxu0 }
 0x2ba   : > { %v1811_v32 = vsub.f32 %v4243_v47, %v4411_v37  ;;  %v1835_v29 = vsub.f32 %v1709_v52, %v4411_v37  ;;  %v4418_v10 = vmax.f32 %v4250_v58, %v1707_v7  ;;  %v1710_v43 = vadd.f32 %v3210_v6, %v1680_v11 }
 0x2bb   : > { %v1672_v33 = vadd.f32 %v1671_v46, %v4038_v24  ;;  %v3531_v13 = vpop.f32.mrf.mxu0 }
 0x2bc   : > { %v1821_v36 = vmul.f32 1.442695, %v1811_v32  ;;  %v1845_v14 = vmul.f32 1.442695, %v1835_v29  ;;  %v1809_v54 = vsub.f32 %v4250_v58, %v4418_v10  ;;  %v1833_v16 = vsub.f32 %v1707_v7, %v4418_v10 }
 0x2bd   : > { %v4425_v59 = vmax.f32 %v4257_v25, %v1710_v43  ;;  %v1708_v47 = vadd.f32 %v3210_v6, %v1672_v33  ;;  %v1693_v55 = vadd.f32 %v3531_v13, %v4043_v26  ;;  %v1684_v45 = vpop.f32.mrf.mxu0 }
 0x2be   : > { %3759 = vpow2.f32 %v1821_v36  ;;  %v1817_v2 = vmul.f32 1.442695, %v1809_v54  ;;  %v1841_v15 = vmul.f32 1.442695, %v1833_v16  ;;  %v1685_v24 = vadd.f32 %v1684_v45, %v4055_v34 }
 0x2bf   : > { %3761 = vpow2.f32 %v1845_v14  ;;  %v1812_v17 = vsub.f32 %v4257_v25, %v4425_v59  ;;  %v1836_v58 = vsub.f32 %v1710_v43, %v4425_v59  ;;  %v4433_v3 = vmax.f32 %v4265_v48, %v1708_v47  ;;  %v3532_v42 = vpop.f32.mrf.mxu0 }
 0x2c0   : > { %3763 = vpow2.f32 %v1817_v2  ;;  %v1713_v12 = vadd.f32 %v3210_v6, %v1693_v55  ;;  %v1711_v18 = vadd.f32 %v3210_v6, %v1685_v24  ;;  %v1696_v26 = vadd.f32 %v3532_v42, %v4071_v44 }
 0x2c1   : > { %3765 = vpow2.f32 %v1841_v15  ;;  %v1823_v19 = vmul.f32 1.442695, %v1812_v17  ;;  %v1847_v28 = vmul.f32 1.442695, %v1836_v58  ;;  %v1810_v34 = vsub.f32 %v4265_v48, %v4433_v3  ;;  %v1687_v27 = vpop.f32.mrf.mxu0 }
 0x2c2   : > { %v1834_v25 = vsub.f32 %v1708_v47, %v4433_v3  ;;  %v4440_v51 = vmax.f32 %v4272_v1, %v1713_v12  ;;  %v4443_v8 = vmax.f32 %v4275_v63, %v1711_v18  ;;  %v1714_v61 = vadd.f32 %v3210_v6, %v1696_v26 }
 0x2c3   : > { %3767 = vpow2.f32 %v1823_v19  ;;  %v1819_v52 = vmul.f32 1.442695, %v1810_v34  ;;  %v1688_v44 = vadd.f32 %v1687_v27, %v4086_v56  ;;  %v4488_v27 = vld [vmem:[%s4756_s7] sm:$0xf] }
 0x2c4   : > { %3769 = vpow2.f32 %v1847_v28  ;;  %v1843_v20 = vmul.f32 1.442695, %v1834_v25  ;;  %v1815_v35 = vsub.f32 %v4272_v1, %v4440_v51  ;;  %v1839_v48 = vsub.f32 %v1713_v12, %v4440_v51 }
 0x2c5   : > { %3771 = vpow2.f32 %v1819_v52  ;;  %v1813_v7 = vsub.f32 %v4275_v63, %v4443_v8  ;;  %v1837_v11 = vsub.f32 %v1711_v18, %v4443_v8  ;;  %v4453_v46 = vmax.f32 %v4285_v9, %v1714_v61 }
 0x2c6   : > { %3773 = vpow2.f32 %v1843_v20  ;;  %v1829_v32 = vmul.f32 1.442695, %v1815_v35  ;;  %v1853_v29 = vmul.f32 1.442695, %v1839_v48  ;;  %v1712_v56 = vadd.f32 %v3210_v6, %v1688_v44 }
 0x2c7   : > { %v1825_v43 = vmul.f32 1.442695, %v1813_v7  ;;  %v1849_v33 = vmul.f32 1.442695, %v1837_v11  ;;  %v1816_v1 = vsub.f32 %v4285_v9, %v4453_v46  ;;  %v1840_v13 = vsub.f32 %v1714_v61, %v4453_v46 }
 0x2c8   : > { %3775 = vpow2.f32 %v1829_v32  ;;  %v4459_v36 = vmax.f32 %v4291_v5, %v1712_v56  ;;  %v2199_v12 = vsel %vm503_vm0, %v4366_v22, 0  ;;  %v3689_v32 = vld [vmem:[%s3964_s22 + $0x60] sm:$0xff]  }
 0x2c9   : > { %3777 = vpow2.f32 %v1853_v29  ;;  %v1831_v63 = vmul.f32 1.442695, %v1816_v1  ;;  %v1855_v14 = vmul.f32 1.442695, %v1840_v13 }
 0x2ca   : > { %3779 = vpow2.f32 %v1825_v43  ;;  %v1814_v54 = vsub.f32 %v4291_v5, %v4459_v36  ;;  %v1838_v6 = vsub.f32 %v1712_v56, %v4459_v36  ;;  %v3692_v56 = vld [vmem:[%s3964_s22 + $0x78] sm:$0xff]   ;;  %v3255_v43 = vld [vmem:[%s4753_s4 + $0x6] sm:$0x3] }
 0x2cb   : > { %v3760_v16 = vpop.eup %3759  ;;  %3781 = vpow2.f32 %v1849_v33  ;;  %3652 = vmatprep.subr.msk.bf16.mxu1 %vm503_vm0, %v3255_v43  ;;  %v2285_v33 = vsel %vm503_vm0, %v3255_v43, 0 }
 0x2cc   : > { %v3762_v47 = vpop.eup %3761  ;;  %v1859_v9 = vmul.f32 %v3760_v16, %v4297_v40  ;;  %3783 = vpow2.f32 %v1831_v63  ;;  %v1827_v55 = vmul.f32 1.442695, %v1814_v54  ;;  %v1851_v45 = vmul.f32 1.442695, %v1838_v6 }
 0x2cd   : > { %v3764_v2 = vpop.eup %3763  ;;  %3785 = vpow2.f32 %v1855_v14 }
 0x2ce   : > { %v3766_v15 = vpop.eup %3765  ;;  %v4465_v24 = vadd.f32 %v3762_v47, %v1859_v9  ;;  %v1857_v17 = vmul.f32 %v3764_v2, %v4302_v39  ;;  %3787 = vpow2.f32 %v1827_v55  ;;  %3545 = vmatprep.mubr.msk.f32.mxu0 %vm490_vm1, %v3764_v2 }
 0x2cf   : > { %3789 = vpow2.f32 %v1851_v45  ;;  %3559 = vmatprep.mubr.msk.f32.mxu1 %vm490_vm1, %v3766_v15 }
 0x2d0   : > { %v3768_v5 = vpop.eup %3767  ;;  %v4470_v58 = vadd.f32 %v3766_v15, %v1857_v17 }
 0x2d1   : > { %v3770_v40 = vpop.eup %3769  ;;  %v1860_v42 = vmul.f32 %v3768_v5, %v4307_v0 }
 0x2d2   : > { %v3772_v18 = vpop.eup %3771 }
 0x2d3   : > { %v3774_v26 = vpop.eup %3773  ;;  %v4475_v19 = vadd.f32 %v3770_v40, %v1860_v42  ;;  %v1858_v39 = vmul.f32 %v3772_v18, %v4312_v53  ;;  %3546 = vmatmul.mubr.msk.f32.vlgmr.msra.gmra.mxu0 %vm490_vm1, %v3772_v18 }
 0x2d4   : > { %3560 = vmatmul.mubr.msk.f32.vlgmr.msra.gmra.mxu1 %vm490_vm1, %v3774_v26  ;;  %3572 = vmatpush3.bf16.msra.mxu0 %v2199_v12 }
 0x2d5   : > { %v3776_v28 = vpop.eup %3775  ;;  %v4480_v34 = vadd.f32 %v3774_v26, %v1858_v39  ;;  %3548 = vmatprep.mubr.msk.f32.mxu0 %vm490_vm1, %v3760_v16  ;;  %3562 = vmatprep.mubr.msk.f32.mxu1 %vm490_vm1, %v3762_v47  ;;  %v3842_v26 = vld [vmem:[%s4752_s3 + $0x18] sm:$0xff] }
 0x2d6   : > { %v3778_v0 = vpop.eup %3777  ;;  %v1863_v22 = vmul.f32 %v3776_v28, %v4320_v57  ;;  %3591 = vmatprep.subr.msk.mxu0 %vm759_vm2, %v4488_v27  ;;  %3582 = vmatpush3.bf16.msra.mxu1 %v2285_v33 }
 0x2d7   : > { %v3780_v53 = vpop.eup %3779  ;;  %3549 = vmatmul.mubr.msk.f32.gmra.mxu0 %vm490_vm1, %v3768_v5  ;;  %3605 = vmatprep.subr.msk.mxu1 %vm759_vm2, %v4488_v27 }
 0x2d8   : > { %v3782_v25 = vpop.eup %3781  ;;  %v4493_v61 = vadd.f32 %v3778_v0, %v1863_v22  ;;  %v1861_v52 = vmul.f32 %v3780_v53, %v4326_v31  ;;  %3563 = vmatmul.mubr.msk.f32.gmra.mxu1 %vm490_vm1, %v3770_v40  ;;  %3551 = vmatprep.mubr.msk.f32.mxu0 %vm490_vm1, %v3780_v53 }
 0x2d9   : > { %v3784_v57 = vpop.eup %3783  ;;  %3565 = vmatprep.mubr.msk.f32.mxu1 %vm490_vm1, %v3782_v25 }
 0x2da   : > { %v3786_v44 = vpop.eup %3785  ;;  %v4499_v20 = vadd.f32 %v3782_v25, %v1861_v52  ;;  %v1864_v35 = vmul.f32 %v3784_v57, %v4329_v23  ;;  %v3690_v23 = vld [vmem:[%s3964_s22 + $0x68] sm:$0xff]  }
 0x2db   : > { %v3788_v48 = vpop.eup %3787  ;;  %v3843_v52 = vld [vmem:[%s4752_s3 + $0x8] sm:$0xff] }
 0x2dc   : > { %v3790_v7 = vpop.eup %3789  ;;  %v4502_v11 = vadd.f32 %v3786_v44, %v1864_v35  ;;  %v1862_v31 = vmul.f32 %v3788_v48, %v4336_v38  ;;  %3552 = vmatmul.mubr.msk.f32.gmra.mxu0 %vm490_vm1, %v3788_v48  ;;  %v3691_v38 = vld [vmem:[%s3964_s22 + $0x70] sm:$0xff]  }
 0x2dd   : > { %3566 = vmatmul.mubr.msk.f32.gmra.mxu1 %vm490_vm1, %v3790_v7  ;;  %3554 = vmatprep.mubr.msk.f32.mxu0 %vm490_vm1, %v3776_v28 }
 0x2de   : > { %v4509_v29 = vadd.f32 %v3790_v7, %v1862_v31  ;;  %3568 = vmatprep.mubr.msk.f32.mxu1 %vm490_vm1, %v3778_v0 }
 0x2e0   : > { %3555 = vmatmul.mubr.msk.f32.gmra.mxu0 %vm490_vm1, %v3784_v57 }
 0x2e1   : > { %3569 = vmatmul.mubr.msk.f32.gmra.mxu1 %vm490_vm1, %v3786_v44  ;;  %3573 = vmatprep.mubr.msk.bf16.mxu0 %vm490_vm1, %v3689_v32 }
 0x2e2   : > { %3583 = vmatprep.mubr.msk.bf16.mxu1 %vm490_vm1, %v3689_v32 }
 0x2e4   : > { %3574 = vmatmul.mubr.msk.bf16.vlgmr.msra.gmra.mxu0 %vm490_vm1, %v3690_v23 }
 0x2e5   : > { %3577 = vmatprep.mubr.msk.bf16.mxu0 %vm490_vm1, %v3691_v38  ;;  %3592 = vmatpush3.msk.msra.mxu0 %vm759_vm2, %v4488_v27 }
 0x2e6   : > { %3619 = vmatprep.subr.msk.mxu0 %vm759_vm2, %v4488_v27  ;;  %3584 = vmatmul.mubr.msk.bf16.vlgmr.msra.gmra.mxu1 %vm490_vm1, %v3690_v23  ;;  %v3844_v23 = vld [vmem:[%s4752_s3 + $0x30] sm:$0xff] }
 0x2e7   : > { %3587 = vmatprep.mubr.msk.bf16.mxu1 %vm490_vm1, %v3691_v38  ;;  %3606 = vmatpush3.msk.msra.mxu1 %vm759_vm2, %v4488_v27 }
 0x2ec   : > { %3578 = vmatmul.mubr.msk.bf16.gmra.mxu0 %vm490_vm1, %v3692_v56 }
 0x2ee   : > { %3588 = vmatmul.mubr.msk.bf16.gmra.mxu1 %vm490_vm1, %v3692_v56 }
 0x393   : > { %v3547_v1 = vpop.f32.mrf.mxu0 }
 0x394   : > { %v4539_v13 = vmul.f32 %v3547_v1, %v4380_v21  ;;  %v3845_v1 = vld [vmem:[%s4752_s3 + $0x20] sm:$0xff] }
 0x395   : > { %v1963_v63 = vpop.f32.mrf.mxu0 }
 0x396   : > { %v4542_v14 = vmul.f32 %v1963_v63, %v4384_v41 }
 0x397   : > { %v3550_v54 = vpop.f32.mrf.mxu0 }
 0x398   : > { %v4545_v6 = vmul.f32 %v3550_v54, %v4388_v62 }
 0x399   : > { %v1973_v16 = vpop.f32.mrf.mxu0 }
 0x39a   : > { %v4548_v47 = vmul.f32 %v1973_v16, %v4392_v49  ;;  %v4565_v49 = vld [vmem:[%s4751_s2 + $0x3] ss:$0 sm:$0xff] }
 0x39c   : > { %v3553_v9 = vpop.f32.mrf.mxu0 }
 0x39d   : > { %v4551_v55 = vmul.f32 %v3553_v9, %v4395_v4  ;;  %v3840_v4 = vld [vmem:[%s4752_s3 + $0x10] sm:$0xff] }
 0x39e   : > { %v1983_v45 = vpop.f32.mrf.mxu0 }
 0x39f   : > { %v4554_v21 = vmul.f32 %v1983_v45, %v4398_v50 }
 0x3a0   : > { %v3556_v2 = vpop.f32.mrf.mxu0 }
 0x3a1   : > { %v4557_v41 = vmul.f32 %v3556_v2, %v4404_v60  ;;  %v3841_v60 = vld [vmem:[%s4752_s3] sm:$0xff] }
 0x3a2   : > { %v1993_v15 = vpop.f32.mrf.mxu0 }
 0x3a3   : > { %v4560_v62 = vmul.f32 %v1993_v15, %v4407_v30  ;;  %v3846_v15 = vld [vmem:[%s4752_s3 + $0x38] sm:$0xff] }
 0x3a4   : > { %v3575_v17 = vpop.f32.mrf.mxu0 }
 0x3a5   : > { %4760 = vst [vmem:[#allocation2_spill] sm:$0xff] %v4560_v62  ;;  %v2244_v50 = vadd.f32 %v3840_v4, %v3575_v17 }
 0x3a6   : > { %v2235_v5 = vpop.f32.mrf.mxu0 }
 0x3a7   : > { %v2276_v40 = vadd.f32 %v4565_v49, %v2244_v50  ;;  %v2236_v30 = vadd.f32 %v3841_v60, %v2235_v5 }
 0x3a8   : > { %v3576_v42 = vpop.f32.mrf.mxu0 }
 0x3a9   : > { %v2370_v12 = vmax.f32 %v4411_v37, %v2276_v40  ;;  %v2274_v18 = vadd.f32 %v4565_v49, %v2236_v30  ;;  %v2247_v39 = vadd.f32 %v3842_v26, %v3576_v42 }
 0x3aa   : > { %v2238_v28 = vpop.f32.mrf.mxu0 }
 0x3ab   : > { %v2378_v0 = vsub.f32 %v4411_v37, %v2370_v12  ;;  %v2402_v22 = vsub.f32 %v2276_v40, %v2370_v12  ;;  %v2368_v53 = vmax.f32 %v4418_v10, %v2274_v18  ;;  %v2277_v25 = vadd.f32 %v4565_v49, %v2247_v39  ;;  %v3847_v12 = vld [vmem:[%s4752_s3 + $0x28] sm:$0xff] }
 0x3ac   : > { %v2239_v57 = vadd.f32 %v3843_v52, %v2238_v28  ;;  %v3579_v44 = vpop.f32.mrf.mxu0 }
 0x3ad   : > { %v2388_v35 = vmul.f32 1.442695, %v2378_v0  ;;  %v2412_v48 = vmul.f32 1.442695, %v2402_v22  ;;  %v2376_v7 = vsub.f32 %v4418_v10, %v2368_v53  ;;  %v2400_v31 = vsub.f32 %v2274_v18, %v2368_v53 }
 0x3ae   : > { %v2371_v32 = vmax.f32 %v4425_v59, %v2277_v25  ;;  %v2275_v37 = vadd.f32 %v4565_v49, %v2239_v57  ;;  %v2260_v38 = vadd.f32 %v3844_v23, %v3579_v44  ;;  %v2251_v56 = vpop.f32.mrf.mxu0 }
 0x3af   : > { %3791 = vpow2.f32 %v2388_v35  ;;  %v2384_v43 = vmul.f32 1.442695, %v2376_v7  ;;  %v2408_v33 = vmul.f32 1.442695, %v2400_v31  ;;  %v2252_v63 = vadd.f32 %v3845_v1, %v2251_v56 }
 0x3b0   : > { %3793 = vpow2.f32 %v2412_v48  ;;  %v2379_v10 = vsub.f32 %v4425_v59, %v2371_v32  ;;  %v2403_v54 = vsub.f32 %v2277_v25, %v2371_v32  ;;  %v2369_v16 = vmax.f32 %v4433_v3, %v2275_v37  ;;  %v3580_v9 = vpop.f32.mrf.mxu0 }
 0x3b1   : > { %3795 = vpow2.f32 %v2384_v43  ;;  %v2280_v45 = vadd.f32 %v4565_v49, %v2260_v38  ;;  %v2278_v2 = vadd.f32 %v4565_v49, %v2252_v63  ;;  %v2263_v17 = vadd.f32 %v3846_v15, %v3580_v9 }
 0x3b2   : > { %3797 = vpow2.f32 %v2408_v33  ;;  %v2390_v4 = vmul.f32 1.442695, %v2379_v10  ;;  %v2377_v50 = vsub.f32 %v4433_v3, %v2369_v16  ;;  %v2254_v5 = vpop.f32.mrf.mxu0  ;;  %v2401_v59 = vsub.f32 %v2275_v37, %v2369_v16 }
 0x3b3   : > { %v2374_v40 = vmax.f32 %v4440_v51, %v2280_v45  ;;  %v2372_v60 = vmax.f32 %v4443_v8, %v2278_v2  ;;  %v2281_v30 = vadd.f32 %v4565_v49, %v2263_v17  ;;  %v2255_v18 = vadd.f32 %v3847_v12, %v2254_v5 }
 0x3b4   : > { %3799 = vpow2.f32 %v2390_v4  ;;  %v2386_v42 = vmul.f32 1.442695, %v2377_v50  ;;  %v2414_v26 = vmul.f32 1.442695, %v2403_v54  ;;  %v2410_v39 = vmul.f32 1.442695, %v2401_v59 }
 0x3b5   : > { %v2382_v28 = vsub.f32 %v4440_v51, %v2374_v40  ;;  %v2406_v3 = vsub.f32 %v2280_v45, %v2374_v40  ;;  %v2380_v0 = vsub.f32 %v4443_v8, %v2372_v60  ;;  %v2404_v22 = vsub.f32 %v2278_v2, %v2372_v60 }
 0x3b6   : > { %3801 = vpow2.f32 %v2386_v42  ;;  %v2375_v53 = vmax.f32 %v4453_v46, %v2281_v30  ;;  %v2279_v52 = vadd.f32 %v4565_v49, %v2255_v18 }
 0x3b7   : > { %3803 = vpow2.f32 %v2410_v39  ;;  %v2396_v25 = vmul.f32 1.442695, %v2382_v28  ;;  %v2392_v57 = vmul.f32 1.442695, %v2380_v0  ;;  %v2416_v44 = vmul.f32 1.442695, %v2404_v22 }
 0x3b8   : > { %v2383_v35 = vsub.f32 %v4453_v46, %v2375_v53  ;;  %3805 = vpow2.f32 %v2414_v26  ;;  %v2373_v48 = vmax.f32 %v4459_v36, %v2279_v52  ;;  %v2420_v51 = vmul.f32 1.442695, %v2406_v3  ;;  %v3693_v22 = vld [vmem:[%s4757_s8 + $0x8] sm:$0xff]  }
 0x3b9   : > { %3807 = vpow2.f32 %v2396_v25  ;;  %v2407_v31 = vsub.f32 %v2281_v30, %v2375_v53  ;;  %3633 = vmatprep.subr.bf16.mxu1 %v3693_v22  ;;  %v3694_v53 = vld [vmem:[%s4757_s8] sm:$0xff]   ;;  %v3537_v25 = vpop.f32.mrf.mxu1 }
 0x3ba   : > { %v2398_v7 = vmul.f32 1.442695, %v2383_v35  ;;  %3809 = vpow2.f32 %v2392_v57  ;;  %v2381_v8 = vsub.f32 %v4459_v36, %v2373_v48  ;;  %v2405_v32 = vsub.f32 %v2279_v52, %v2373_v48 }
 0x3bb   : > { %3811 = vpow2.f32 %v2416_v44  ;;  %v2422_v46 = vmul.f32 1.442695, %v2407_v31  ;;  %v1754_v52 = vpop.f32.mrf.mxu1 }
 0x3bc   : > { %v3792_v37 = vpop.eup %3791  ;;  %3813 = vpow2.f32 %v2398_v7  ;;  %v2394_v49 = vmul.f32 1.442695, %v2381_v8  ;;  %v2418_v38 = vmul.f32 1.442695, %v2405_v32 }
 0x3bd   : > { %v3794_v23 = vpop.eup %3793  ;;  %3815 = vpow2.f32 %v2420_v51  ;;  %v2426_v1 = vmul.f32 %v3792_v37, %v4465_v24  ;;  %v3538_v57 = vpop.f32.mrf.mxu1 }
 0x3be   : > { %v3796_v56 = vpop.eup %3795  ;;  %3817 = vpow2.f32 %v2394_v49 }
 0x3bf   : > { %v3798_v43 = vpop.eup %3797  ;;  %v2424_v33 = vmul.f32 %v3796_v56, %v4470_v58  ;;  %3593 = vmatprep.mubr.msk.f32.mxu0 %vm490_vm1, %v3796_v56  ;;  %3819 = vpow2.f32 %v2418_v38  ;;  %v2434_v58 = vadd.f32 %v3794_v23, %v2426_v1  ;;  %v1757_v44 = vpop.f32.mrf.mxu1 }
 0x3c0   : > { %3607 = vmatprep.mubr.msk.f32.mxu1 %vm490_vm1, %v3798_v43  ;;  %3821 = vpow2.f32 %v2422_v46 }
 0x3c1   : > { %v3800_v36 = vpop.eup %3799  ;;  %v2432_v63 = vadd.f32 %v3798_v43, %v2424_v33  ;;  %v3541_v35 = vpop.f32.mrf.mxu1 }
 0x3c2   : > { %v2427_v16 = vmul.f32 %v3800_v36, %v4475_v19 }
 0x3c3   : > { %v3802_v10 = vpop.eup %3801  ;;  %3823 = vrcp.f32 %v2432_v63  ;;  %v1770_v48 = vpop.f32.mrf.mxu1 }
 0x3c4   : > { %v3804_v54 = vpop.eup %3803  ;;  %v2425_v9 = vmul.f32 %v3802_v10, %v4480_v34  ;;  %3594 = vmatmul.mubr.msk.f32.vlgmr.msra.gmra.mxu0 %vm490_vm1, %v3802_v10 }
 0x3c5   : > { %3608 = vmatmul.mubr.msk.f32.vlgmr.msra.gmra.mxu1 %vm490_vm1, %v3804_v54  ;;  %3596 = vmatprep.mubr.msk.f32.mxu0 %vm490_vm1, %v3792_v37  ;;  %v3806_v45 = vpop.eup %3805  ;;  %v3542_v51 = vpop.f32.mrf.mxu1 }
 0x3c6   : > { %v2433_v2 = vadd.f32 %v3804_v54, %v2425_v9  ;;  %3610 = vmatprep.mubr.msk.f32.mxu1 %vm490_vm1, %v3794_v23  ;;  %3620 = vmatpush3.msk.msra.mxu0 %vm759_vm2, %v4488_v27  ;;  %v3808_v24 = vpop.eup %3807  ;;  %v2435_v17 = vadd.f32 %v3806_v45, %v2427_v16  ;;  %v3848_v9 = vld [vmem:[%s4755_s6] sm:$0xff] }
 0x3c7   : > { %v3810_v15 = vpop.eup %3809  ;;  %v2430_v50 = vmul.f32 %v3808_v24, %v4493_v61  ;;  %3634 = vmatpush3.bf16.msra.mxu1 %v3693_v22  ;;  %v1773_v7 = vpop.f32.mrf.mxu1 }
 0x3c8   : > { %3825 = vrcp.f32 %v2433_v2  ;;  %3597 = vmatmul.mubr.msk.f32.gmra.mxu0 %vm490_vm1, %v3800_v36  ;;  %v3812_v19 = vpop.eup %3811  ;;  %v2428_v34 = vmul.f32 %v3810_v15, %v4499_v20  ;;  %3635 = vmatprep.subr.bf16.mxu1 %v3694_v53 }
 0x3c9   : > { %3827 = vrcp.f32 %v2434_v58  ;;  %3611 = vmatmul.mubr.msk.f32.gmra.mxu1 %vm490_vm1, %v3806_v45  ;;  %3599 = vmatprep.mubr.msk.f32.mxu0 %vm490_vm1, %v3810_v15  ;;  %v3814_v4 = vpop.eup %3813  ;;  %v3561_v31 = vpop.f32.mrf.mxu1  ;;  %v1755_v58 = vadd.f32 %v3848_v9, %v1754_v52  ;;  %v3849_v45 = vld [vmem:[%s4755_s6 + $0x8] sm:$0xff]  ;;  %v3217_v15 = vld [vmem:[%s4754_s5 + $0x2] ss:$0 sm:$0xff]  ;;  %v3855_v52 = vld [vmem:[%s4755_s6 + $0x30] sm:$0xff] }
 0x3ca   : > { %3613 = vmatprep.mubr.msk.f32.mxu1 %vm490_vm1, %v3812_v19  ;;  %v3816_v27 = vpop.eup %3815  ;;  %v2436_v5 = vadd.f32 %v3812_v19, %v2428_v34  ;;  %3829 = vrcp.f32 %v2435_v17  ;;  %v2431_v60 = vmul.f32 %v3814_v4, %v4502_v11  ;;  %v1758_v2 = vadd.f32 %v3849_v45, %v1757_v44  ;;  %v3850_v34 = vld [vmem:[%s4755_s6 + $0x18] sm:$0xff] }
 0x3cb   : > { %v3818_v59 = vpop.eup %3817  ;;  %v2438_v20 = vadd.f32 %v3816_v27, %v2430_v50  ;;  %3636 = vmatpush3.bf16.msra.mxu1 %v3694_v53  ;;  %v2092_v8 = vpop.f32.mrf.mxu1  ;;  %v3854_v53 = vld [vmem:[%s4755_s6 + $0x38] sm:$0xff] }
 0x3cc   : > { %v3820_v40 = vpop.eup %3819  ;;  %3831 = vrcp.f32 %v2436_v5  ;;  %v2429_v30 = vmul.f32 %v3818_v59, %v4509_v29  ;;  %3600 = vmatmul.mubr.msk.f32.gmra.mxu0 %vm490_vm1, %v3818_v59  ;;  %v1794_v59 = vadd.f32 %v3217_v15, %v1758_v2 }
 0x3cd   : > { %3614 = vmatmul.mubr.msk.f32.gmra.mxu1 %vm490_vm1, %v3820_v40  ;;  %3602 = vmatprep.mubr.msk.f32.mxu0 %vm490_vm1, %v3808_v24  ;;  %v3822_v61 = vpop.eup %3821  ;;  %v3564_v32 = vpop.f32.mrf.mxu1 }
 0x3ce   : > { %v2437_v42 = vadd.f32 %v3820_v40, %v2429_v30  ;;  %3616 = vmatprep.mubr.msk.f32.mxu1 %vm490_vm1, %v3816_v27  ;;  %v2439_v18 = vadd.f32 %v3822_v61, %v2431_v60  ;;  %v3851_v27 = vld [vmem:[%s4755_s6 + $0x10] sm:$0xff]  ;;  %v1793_v40 = vadd.f32 %v3217_v15, %v1755_v58 }
 0x3cf   : > { %v2102_v37 = vpop.f32.mrf.mxu1  ;;  %v1763_v5 = vadd.f32 %v3851_v27, %v3537_v25  ;;  %v1782_v25 = vadd.f32 %v3854_v53, %v3542_v51 }
 0x3d0   : > { %v3824_v12 = vpop.eup %3823  ;;  %3833 = vrcp.f32 %v2437_v42  ;;  %3603 = vmatmul.mubr.msk.f32.gmra.mxu0 %vm490_vm1, %v3814_v4  ;;  %v1766_v4 = vadd.f32 %v3850_v34, %v3538_v57  ;;  %v3852_v42 = vld [vmem:[%s4755_s6 + $0x20] sm:$0xff]  ;;  %v1779_v57 = vadd.f32 %v3855_v52, %v3541_v35 }
 0x3d1   : > { %3835 = vrcp.f32 %v2438_v20  ;;  %3617 = vmatmul.mubr.msk.f32.gmra.mxu1 %vm490_vm1, %v3822_v61  ;;  %3621 = vmatprep.mubr.msk.f32.mxu0 %vm490_vm1, %v3824_v12  ;;  %v4655_v23 = vpop.f32.mrf.mxu1  ;;  %v1771_v12 = vadd.f32 %v3852_v42, %v1770_v48 }
 0x3d2   : > { %3837 = vrcp.f32 %v2439_v18  ;;  %v3853_v18 = vld [vmem:[%s4755_s6 + $0x28] sm:$0xff] }
 0x3d3   : > { %v4657_v49 = vpop.f32.mrf.mxu1 }
 0x3d5   : > { %v3826_v11 = vpop.eup %3825  ;;  %v4659_v38 = vpop.f32.mrf.mxu1 }
 0x3d6   : > { %v3828_v29 = vpop.eup %3827  ;;  %3622 = vmatmul.mubr.msk.f32.vlgmr.msra.gmra.mxu0 %vm490_vm1, %v3826_v11  ;;  %v1774_v11 = vadd.f32 %v3853_v18, %v1773_v7 }
 0x3d7   : > { %3624 = vmatprep.mubr.msk.f32.mxu0 %vm490_vm1, %v3828_v29  ;;  %v3830_v26 = vpop.eup %3829  ;;  %v4661_v56 = vpop.f32.mrf.mxu1  ;;  %v1796_v29 = vadd.f32 %v3217_v15, %v1766_v4 }
 0x3d9   : > { %v3832_v39 = vpop.eup %3831  ;;  %v3585_v46 = vpop.f32.mrf.mxu1 }
 0x3da   : > { %3625 = vmatmul.mubr.msk.f32.gmra.mxu0 %vm490_vm1, %v3830_v26  ;;  %v4691_v26 = vld [vmem:[%s4754_s5 + $0x3] ss:$0 sm:$0xff]  ;;  %v2330_v58 = vadd.f32 %v3851_v27, %v3585_v46 }
 0x3db   : > { %3627 = vmatprep.mubr.msk.f32.mxu0 %vm490_vm1, %v3832_v39  ;;  %v2321_v43 = vpop.f32.mrf.mxu1  ;;  %v2140_v39 = vmul.f32 %v3561_v31, %v1794_v59  ;;  %v2142_v31 = vmul.f32 %v3564_v32, %v1796_v29 }
 0x3dc   : > { %v2322_v20 = vadd.f32 %v3848_v9, %v2321_v43  ;;  %v1797_v43 = vadd.f32 %v3217_v15, %v1771_v12 }
 0x3dd   : > { %v3834_v28 = vpop.eup %3833  ;;  %v3586_v33 = vpop.f32.mrf.mxu1  ;;  %v2150_v12 = vadd.f32 %v2142_v31, %v4545_v6 }
 0x3de   : > { %v3836_v3 = vpop.eup %3835  ;;  %3628 = vmatmul.mubr.msk.f32.gmra.mxu0 %vm490_vm1, %v3834_v28  ;;  %v2139_v28 = vmul.f32 %v2092_v8, %v1793_v40  ;;  %v2360_v48 = vadd.f32 %v4691_v26, %v2322_v20  ;;  %v1798_v8 = vadd.f32 %v3217_v15, %v1774_v11 }
 0x3df   : > { %3630 = vmatprep.mubr.msk.f32.mxu0 %vm490_vm1, %v3836_v3  ;;  %v3838_v0 = vpop.eup %3837  ;;  %v2324_v36 = vpop.f32.mrf.mxu1  ;;  %v1795_v3 = vadd.f32 %v3217_v15, %v1763_v5  ;;  %v1800_v5 = vadd.f32 %v3217_v15, %v1782_v25 }
 0x3e0   : > { %v2325_v61 = vadd.f32 %v3849_v45, %v2324_v36  ;;  %v2333_v36 = vadd.f32 %v3850_v34, %v3586_v33  ;;  %v2148_v45 = vadd.f32 %v2140_v39, %v4539_v13  ;;  %v2147_v51 = vadd.f32 %v2139_v28, %v4542_v14 }
 0x3e1   : > { %v4663_v1 = vpop.f32.mrf.mxu1  ;;  %v2141_v9 = vmul.f32 %v2102_v37, %v1795_v3  ;;  %v2144_v20 = vmul.f32 %v4655_v23, %v1798_v8  ;;  %v2143_v13 = vmul.f32 %v4657_v49, %v1797_v43  ;;  %v1799_v33 = vadd.f32 %v3217_v15, %v1779_v57 }
 0x3e2   : > { %3631 = vmatmul.mubr.msk.f32.gmra.mxu0 %vm490_vm1, %v3838_v0  ;;  %v2361_v44 = vadd.f32 %v4691_v26, %v2325_v61  ;;  %v2363_v37 = vadd.f32 %v4691_v26, %v2333_v36  ;;  %v2362_v34 = vadd.f32 %v4691_v26, %v2330_v58  ;;  %v2346_v39 = vadd.f32 %v3855_v52, %v4663_v1 }
 0x3e3   : > { %v2337_v63 = vpop.f32.mrf.mxu1  ;;  %v2149_v14 = vadd.f32 %v2141_v9, %v4548_v47  ;;  %v2145_v47 = vmul.f32 %v4661_v56, %v1799_v33  ;;  %v2151_v11 = vadd.f32 %v2143_v13, %v4554_v21 }
 0x3e4   : > { %v2338_v32 = vadd.f32 %v3852_v42, %v2337_v63  ;;  %v2146_v42 = vmul.f32 %v4659_v38, %v1800_v5  ;;  %v2366_v52 = vadd.f32 %v4691_v26, %v2346_v39 }
 0x3e5   : > { %v4665_v10 = vpop.f32.mrf.mxu1 }
 0x3e6   : > { %v2364_v49 = vadd.f32 %v4691_v26, %v2338_v32  ;;  %v2154_v56 = vadd.f32 %v2146_v42, %v4557_v41  ;;  %v3289_v32 = vld [vmem:[%s4758_s9] ss:$0 sm:$0xff] }
 0x3e7   : > { %v2340_v54 = vpop.f32.mrf.mxu1 }
 0x3e8   : > { %v2341_v59 = vadd.f32 %v3853_v18, %v2340_v54  ;;  %v2152_v18 = vadd.f32 %v2144_v20, %v4551_v55 }
 0x484   : > { %v3595_v16 = vpop.f32.mrf.mxu0 }
 0x485   : > { %v3609_v24 = vpop.f32.mrf.mxu1  ;;  %v2699_v35 = vmul.f32 %v3595_v16, %v2148_v45 }
 0x486   : > { %v2530_v17 = vpop.f32.mrf.mxu0  ;;  %v2707_v40 = vmul.f32 %v3609_v24, %v2361_v44 }
 0x487   : > { %v2659_v19 = vpop.f32.mrf.mxu1  ;;  %v2698_v61 = vmul.f32 %v2530_v17, %v2147_v51  ;;  %v2365_v17 = vadd.f32 %v4691_v26, %v2341_v59 }
 0x488   : > { %v3598_v50 = vpop.f32.mrf.mxu0  ;;  %v2706_v62 = vmul.f32 %v2659_v19, %v2360_v48  ;;  %v2715_v27 = vadd.f32 %v2707_v40, %v2699_v35 }
 0x489   : > { %v3612_v60 = vpop.f32.mrf.mxu1  ;;  %v2701_v16 = vmul.f32 %v3598_v50, %v2150_v12 }
 0x48a   : > { %v2540_v30 = vpop.f32.mrf.mxu0  ;;  %v2709_v24 = vmul.f32 %v3612_v60, %v2363_v37  ;;  %v2714_v6 = vadd.f32 %v2706_v62, %v2698_v61 }
 0x48b   : > { %v2669_v0 = vpop.f32.mrf.mxu1  ;;  %v2700_v23 = vmul.f32 %v2540_v30, %v2149_v14  ;;  %v2349_v30 = vadd.f32 %v3854_v53, %v4665_v10  ;;  %v4761_v10 = vld [vmem:[#allocation2_spill] sm:$0xff] }
 0x48c   : > { %v3601_v22 = vpop.f32.mrf.mxu0  ;;  %v2708_v63 = vmul.f32 %v2669_v0, %v2362_v34  ;;  %v2717_v28 = vadd.f32 %v2709_v24, %v2701_v16  ;;  %v2153_v53 = vadd.f32 %v2145_v47, %v4761_v10 }
 0x48d   : > { %v3615_v2 = vpop.f32.mrf.mxu1  ;;  %v2703_v38 = vmul.f32 %v3601_v22, %v2152_v18  ;;  %v2367_v1 = vadd.f32 %v4691_v26, %v2349_v30 }
 0x48e   : > { %v2550_v7 = vpop.f32.mrf.mxu0  ;;  %v2711_v3 = vmul.f32 %v3615_v2, %v2365_v17  ;;  %v2716_v0 = vadd.f32 %v2708_v63, %v2700_v23 }
 0x48f   : > { %v2679_v54 = vpop.f32.mrf.mxu1  ;;  %v2702_v25 = vmul.f32 %v2550_v7, %v2151_v11 }
 0x490   : > { %v3604_v4 = vpop.f32.mrf.mxu0  ;;  %v2710_v57 = vmul.f32 %v2679_v54, %v2364_v49  ;;  %v2719_v43 = vadd.f32 %v2711_v3, %v2703_v38 }
 0x491   : > { %v3618_v50 = vpop.f32.mrf.mxu1  ;;  %v2705_v22 = vmul.f32 %v3604_v4, %v2154_v56 }
 0x492   : > { %v2560_v46 = vpop.f32.mrf.mxu0  ;;  %v2713_v7 = vmul.f32 %v3618_v50, %v2367_v1  ;;  %v2718_v41 = vadd.f32 %v2710_v57, %v2702_v25 }
 0x493   : > { %v2689_v21 = vpop.f32.mrf.mxu1  ;;  %v2704_v9 = vmul.f32 %v2560_v46, %v2153_v53 }
 0x494   : > { %v2712_v58 = vmul.f32 %v2689_v21, %v2366_v52  ;;  %v2721_v35 = vadd.f32 %v2713_v7, %v2705_v22 }
 0x496   : > { %v3623_v19 = vpop.f32.mrf.mxu0  ;;  %v2720_v40 = vadd.f32 %v2712_v58, %v2704_v9 }
 0x497   : > { %v2868_v60 = vmul.f32 %v3623_v19, %v2715_v27 }
 0x498   : > { %v2828_v15 = vpop.f32.mrf.mxu0 }
 0x499   : > { %v2867_v29 = vmul.f32 %v2828_v15, %v2714_v6 }
 0x49a   : > { %v3626_v62 = vpop.f32.mrf.mxu0 }
 0x49b   : > { %v2875_v55 = vpack.c.bf16 %v2868_v60, %v2867_v29  ;;  %v2870_v48 = vmul.f32 %v3626_v62, %v2717_v28 }
 0x49c   : > { %v2838_v44 = vpop.f32.mrf.mxu0 }
 0x49d   : > { %v2869_v31 = vmul.f32 %v2838_v44, %v2716_v0  ;;  %3637 = vmatprep.mubr.msk.bf16.mxu1 %vm2902_vm3, %v2875_v55 }
 0x49e   : > { %v3629_v36 = vpop.f32.mrf.mxu0 }
 0x49f   : > { %v2876_v8 = vpack.c.bf16 %v2870_v48, %v2869_v31  ;;  %v2872_v51 = vmul.f32 %v3629_v36, %v2719_v43 }
 0x4a0   : > { %v2848_v45 = vpop.f32.mrf.mxu0 }
 0x4a1   : > { %3638 = vmatmul.mubr.msk.bf16.vlgmr.msra.gmra.mxu1 %vm2902_vm3, %v2876_v8  ;;  %v2871_v2 = vmul.f32 %v2848_v45, %v2718_v41 }
 0x4a2   : > { %v3632_v5 = vpop.f32.mrf.mxu0 }
 0x4a3   : > { %v2877_v59 = vpack.c.bf16 %v2872_v51, %v2871_v2  ;;  %v2874_v26 = vmul.f32 %v3632_v5, %v2721_v35 }
 0x4a4   : > { %v2858_v61 = vpop.f32.mrf.mxu0 }
 0x4a5   : > { %v2873_v4 = vmul.f32 %v2858_v61, %v2720_v40  ;;  %3641 = vmatprep.mubr.msk.bf16.mxu1 %vm2902_vm3, %v2877_v59 }
 0x4a7   : > { %v2878_v20 = vpack.c.bf16 %v2874_v26, %v2873_v4 }
 0x4a9   : > { %3642 = vmatmul.mubr.msk.bf16.gmra.mxu1 %vm2902_vm3, %v2878_v20 }
 0x561   : > { %v3639_v12 = vpop.f32.mrf.mxu1 }
 0x562   : > { %v2958_v37 = vadd.f32 %v3639_v12, %v3289_v32 }
 0x563   : > { %v2949_v46 = vpop.f32.mrf.mxu1 }
 0x564   : > { %2982 = vst.msk [vmem:[%s441_s21 + $0x10] sm:$0xff] %vm2902_vm3, %v2958_v37  ;;  %v2950_v13 = vadd.f32 %v3289_v32, %v2949_v46 }
 0x565   : > { %v3640_v33 = vpop.f32.mrf.mxu1 }
 0x566   : > { %2980 = vst.msk [vmem:[%s441_s21] sm:$0xff] %vm2902_vm3, %v2950_v13  ;;  %v2961_v14 = vadd.f32 %v3640_v33, %v3289_v32 }
 0x567   : > { %v2952_v34 = vpop.f32.mrf.mxu1 }
 0x568   : > { %2983 = vst.msk [vmem:[%s441_s21 + $0x18] sm:$0xff] %vm2902_vm3, %v2961_v14  ;;  %v2953_v54 = vadd.f32 %v3289_v32, %v2952_v34 }
 0x569   : > { %v3643_v16 = vpop.f32.mrf.mxu1 }
 0x56a   : > { %2981 = vst.msk [vmem:[%s441_s21 + $0x8] sm:$0xff] %vm2902_vm3, %v2953_v54  ;;  %v2974_v24 = vadd.f32 %v3643_v16, %v3289_v32 }
 0x56b   : > { %v2965_v17 = vpop.f32.mrf.mxu1 }
 0x56c   : > { %2986 = vst.msk [vmem:[%s441_s21 + $0x30] sm:$0xff] %vm2902_vm3, %v2974_v24  ;;  %v2966_v19 = vadd.f32 %v3289_v32, %v2965_v17 }
 0x56d   : > { %v3644_v23 = vpop.f32.mrf.mxu1 }
 0x56e   : > { %2984 = vst.msk [vmem:[%s441_s21 + $0x20] sm:$0xff] %vm2902_vm3, %v2966_v19  ;;  %v2977_v63 = vadd.f32 %v3644_v23, %v3289_v32 }
 0x56f   : > { %v2968_v27 = vpop.f32.mrf.mxu1 }
 0x570   : > { %2987 = vst.msk [vmem:[%s441_s21 + $0x38] sm:$0xff] %vm2902_vm3, %v2977_v63  ;;  %v2969_v6 = vadd.f32 %v3289_v32, %v2968_v27 }
 0x572   : > { %2985 = vst.msk [vmem:[%s441_s21 + $0x28] sm:$0xff] %vm2902_vm3, %v2969_v6 }
 0x573 PF: > { %s20_s15 = sadd.s32 1, %s3878_s15   ;;  %s4762_s13 = smov %s3874_s14 }
 0x574   : > { %p17_p5 = scmp.ge.s32.totalorder %s20_s15, 4   ;;  %s4763_s14 = smov %s4765_s16 }
 0x576   :  { %19 = sbr.rel (!%p17_p5) target bundleno = 2 (0x2), region = 111 }

</bundles_post_ra>
